<compile_context>
chip_gen: v5e
topology: v5e:2x2
jax: 0.10.0
libtpu: 0.0.40
codegen_flags: <defaults>
</compile_context>

<pallas_src>
import math
import functools

import jax
import jax.numpy as jnp
from jax.experimental import pallas as pl
from jax.experimental.pallas import tpu as pltpu


def _embed_gather_kernel(ids_ref, table_hbm, out_ref, gbuf, sems, *,
                         scale, tile_tokens):
    """One grid step produces one (tile_tokens, E) output block.

    ids_ref:   (T_pad,)             int32 SMEM (scalar prefetch)
    table_hbm: (V, E)               HBM ref (pl.ANY) -- never copied wholesale
    out_ref:   (tile_tokens, E)     VMEM auto-pipelined output block
    gbuf:      (2, tile_tokens, E)  VMEM double-buffered gather landing buffer
    sems:      (2, tile_tokens)     per-row DMA semaphores (one set per slot)
    """
    step = pl.program_id(0)
    nsteps = pl.num_programs(0)
    slot = step % 2

    def row_copy(tok, slot_, r):
        return pltpu.make_async_copy(
            table_hbm.at[pl.ds(tok, 1)],      # one (1, E) row from HBM
            gbuf.at[slot_, pl.ds(r, 1)],      # into row r of slot `slot_`
            sems.at[slot_, r],
        )

    def issue_tile(tile_idx, slot_):
        base = tile_idx * tile_tokens
        # Unrolled issue loop: back-to-back descriptors keep the DMA engine
        # busy; only scalar addressing work per row.
        for r in range(tile_tokens):
            row_copy(ids_ref[base + r], slot_, r).start()

    # Prime the pipeline: the very first step has to issue its own gathers.
    @pl.when(step == 0)
    def _():
        issue_tile(0, 0)

    # Prefetch the NEXT tile's rows into the other slot.  Their transfer time
    # is hidden behind this step's waits / scale / output writeback.
    @pl.when(step + 1 < nsteps)
    def _():
        issue_tile(step + 1, (step + 1) % 2)

    # Wait for every row of the current tile (issued one step earlier, or by
    # the priming branch on step 0).
    for r in range(tile_tokens):
        row_copy(0, slot, r).wait()

    # sqrt(emb_size) scale on the VPU, lane-dense (tile_tokens, E) store.
    out_ref[...] = (gbuf[slot] * scale).astype(out_ref.dtype)


def input_embeddings(x, table, *, tile_tokens=128):
    """x: (B, S) int token ids; table: (V, E) embedding weights."""
    B, S = x.shape
    V, E = table.shape
    T = B * S
    scale = math.sqrt(E)

    # Sublane-aligned tile, no larger than the (padded) token count.
    tile_tokens = int(min(tile_tokens, pl.cdiv(T, 8) * 8))
    tile_tokens = max(8, (tile_tokens // 8) * 8)

    # Flatten, clamp (guards the DMA against bad ids) and pad to whole tiles.
    # TODO(synk): PyTorch nn.Embedding raises on out-of-range ids; here they
    # are clamped to the valid range instead.
    ids = jnp.clip(x.reshape(T).astype(jnp.int32), 0, V - 1)
    T_pad = pl.cdiv(T, tile_tokens) * tile_tokens
    if T_pad != T:
        ids = jnp.pad(ids, (0, T_pad - T))

    grid = (T_pad // tile_tokens,)

    out_flat = pl.pallas_call(
        functools.partial(_embed_gather_kernel,
                          scale=scale, tile_tokens=tile_tokens),
        out_shape=jax.ShapeDtypeStruct((T_pad, E), table.dtype),
        grid_spec=pltpu.PrefetchScalarGridSpec(
            num_scalar_prefetch=1,                   # ids -> SMEM
            grid=grid,
            in_specs=[
                pl.BlockSpec(memory_space=pl.ANY),   # table stays in HBM
            ],
            out_specs=pl.BlockSpec((tile_tokens, E), lambda i, ids: (i, 0)),
            scratch_shapes=[
                pltpu.VMEM((2, tile_tokens, E), table.dtype),
                pltpu.SemaphoreType.DMA((2, tile_tokens)),
            ],
        ),
        compiler_params=pltpu.CompilerParams(
            # Cross-step double-buffering makes steps order-dependent.
            dimension_semantics=("arbitrary",),
            vmem_limit_bytes=64 * 1024 * 1024,
        ),
    )(ids, table)

    return out_flat[:T].reshape(B, S, E)


if __name__ == "__main__":
    emb_size = 128        # lane-dense output (E is the last, 128-wide dim)
    vocab_size = 64
    batch, seq = 2, 8

    key = jax.random.PRNGKey(0)
    k_tab, k_ids = jax.random.split(key)

    # Deterministic "parameters" (nn.Embedding weight) and example input.
    table = jax.random.normal(k_tab, (vocab_size, emb_size), dtype=jnp.float32)
    x = jax.random.randint(k_ids, (batch, seq), 0, vocab_size, dtype=jnp.int32)

    out = input_embeddings(x, table)
    out = jax.block_until_ready(out)

    # Pure-JAX reference.
    ref = jnp.take(table, x, axis=0) * math.sqrt(emb_size)

    assert out.shape == (batch, seq, emb_size), out.shape
    assert out.dtype == jnp.float32, out.dtype
    assert jnp.allclose(out, ref, atol=1e-5, rtol=1e-5), "mismatch vs reference"

    print("KERNEL_OK")
</pallas_src>

<mosaic_0001>
module attributes {stable_mosaic.version = 11 : i64} {
  func.func @_embed_gather_kernel(%arg0: i32, %arg1: memref<16xi32, #tpu.memory_space<smem>>, %arg2: memref<64x128xf32, #tpu.memory_space<any>>, %arg3: memref<16x128xf32, #tpu.memory_space<vmem>>, %arg4: memref<2x16x128xf32, #tpu.memory_space<vmem>>, %arg5: memref<2x16x!tpu.dma_semaphore, #tpu.memory_space<semaphore_mem>>) attributes {dimension_semantics = [#tpu.dimension_semantics<arbitrary>], iteration_bounds = array<i64: 1>, scalar_prefetch = 1 : i64, scratch_operands = 2 : i64, tpu.core_type = #tpu.core_type<tc>, window_params = [{}, {transform_indices = @transform_1, window_bounds = array<i64: 16, 128>}]} {
    %c2_i32 = arith.constant 2 : i32
    %c0_i32 = arith.constant 0 : i32
    %0 = arith.cmpi eq, %c2_i32, %c0_i32 : i32
    %c1_i32 = arith.constant 1 : i32
    %1 = arith.select %0, %c1_i32, %c2_i32 : i32
    %2 = arith.remsi %arg0, %1 : i32
    %c0_i32_0 = arith.constant 0 : i32
    %3 = arith.cmpi ne, %2, %c0_i32_0 : i32
    %c0_i32_1 = arith.constant 0 : i32
    %4 = arith.cmpi slt, %2, %c0_i32_1 : i32
    %c0_i32_2 = arith.constant 0 : i32
    %5 = arith.cmpi slt, %1, %c0_i32_2 : i32
    %6 = arith.xori %4, %5 : i1
    %7 = arith.andi %6, %3 : i1
    %8 = arith.addi %2, %1 : i32
    %9 = arith.select %7, %8, %2 : i32
    %c0_i32_3 = arith.constant 0 : i32
    %10 = arith.cmpi eq, %arg0, %c0_i32_3 : i32
    %11 = arith.extui %10 : i1 to i32
    %c0_i32_4 = arith.constant 0 : i32
    %12 = arith.cmpi ne, %11, %c0_i32_4 : i32
    scf.if %12 {
      %c0_78 = arith.constant 0 : index
      %103 = memref.load %arg1[%c0_78] : memref<16xi32, #tpu.memory_space<smem>>
      %c0_i32_79 = arith.constant 0 : i32
      %c0_i32_80 = arith.constant 0 : i32
      %c0_i32_81 = arith.constant 0 : i32
      %c0_i32_82 = arith.constant 0 : i32
      %104 = tpu.memref_slice %arg2[%103, %c0_i32_82] : memref<64x128xf32, #tpu.memory_space<any>> -> memref<1x128xf32, #tpu.memory_space<any>>
      %c0_i32_83 = arith.constant 0 : i32
      %c0_i32_84 = arith.constant 0 : i32
      %105 = tpu.memref_slice %arg4[%c0_i32_79, %c0_i32_83, %c0_i32_84] : memref<2x16x128xf32, #tpu.memory_space<vmem>> -> memref<1x1x128xf32, #tpu.memory_space<vmem>>
      %106 = tpu.memref_squeeze %105 : memref<1x1x128xf32, #tpu.memory_space<vmem>> -> memref<1x128xf32, #tpu.memory_space<vmem>>
      %107 = tpu.memref_slice %arg5[%c0_i32_80, %c0_i32_81] : memref<2x16x!tpu.dma_semaphore, #tpu.memory_space<semaphore_mem>> -> memref<1x1x!tpu.dma_semaphore, #tpu.memory_space<semaphore_mem>>
      %108 = tpu.memref_squeeze %107 : memref<1x1x!tpu.dma_semaphore, #tpu.memory_space<semaphore_mem>> -> memref<!tpu.dma_semaphore, #tpu.memory_space<semaphore_mem>>
      tpu.enqueue_dma source(%104 : memref<1x128xf32, #tpu.memory_space<any>>) target(%106 : memref<1x128xf32, #tpu.memory_space<vmem>>) target_semaphore(%108 : memref<!tpu.dma_semaphore, #tpu.memory_space<semaphore_mem>>)
      %c1 = arith.constant 1 : index
      %109 = memref.load %arg1[%c1] : memref<16xi32, #tpu.memory_space<smem>>
      %c0_i32_85 = arith.constant 0 : i32
      %c0_i32_86 = arith.constant 0 : i32
      %c1_i32_87 = arith.constant 1 : i32
      %c0_i32_88 = arith.constant 0 : i32
      %110 = tpu.memref_slice %arg2[%109, %c0_i32_88] : memref<64x128xf32, #tpu.memory_space<any>> -> memref<1x128xf32, #tpu.memory_space<any>>
      %c1_i32_89 = arith.constant 1 : i32
      %c0_i32_90 = arith.constant 0 : i32
      %111 = tpu.memref_slice %arg4[%c0_i32_85, %c1_i32_89, %c0_i32_90] : memref<2x16x128xf32, #tpu.memory_space<vmem>> -> memref<1x1x128xf32, #tpu.memory_space<vmem>>
      %112 = tpu.memref_squeeze %111 : memref<1x1x128xf32, #tpu.memory_space<vmem>> -> memref<1x128xf32, #tpu.memory_space<vmem>>
      %113 = tpu.memref_slice %arg5[%c0_i32_86, %c1_i32_87] : memref<2x16x!tpu.dma_semaphore, #tpu.memory_space<semaphore_mem>> -> memref<1x1x!tpu.dma_semaphore, #tpu.memory_space<semaphore_mem>>
      %114 = tpu.memref_squeeze %113 : memref<1x1x!tpu.dma_semaphore, #tpu.memory_space<semaphore_mem>> -> memref<!tpu.dma_semaphore, #tpu.memory_space<semaphore_mem>>
      tpu.enqueue_dma source(%110 : memref<1x128xf32, #tpu.memory_space<any>>) target(%112 : memref<1x128xf32, #tpu.memory_space<vmem>>) target_semaphore(%114 : memref<!tpu.dma_semaphore, #tpu.memory_space<semaphore_mem>>)
      %c2 = arith.constant 2 : index
      %115 = memref.load %arg1[%c2] : memref<16xi32, #tpu.memory_space<smem>>
      %c0_i32_91 = arith.constant 0 : i32
      %c0_i32_92 = arith.constant 0 : i32
      %c2_i32_93 = arith.constant 2 : i32
      %c0_i32_94 = arith.constant 0 : i32
      %116 = tpu.memref_slice %arg2[%115, %c0_i32_94] : memref<64x128xf32, #tpu.memory_space<any>> -> memref<1x128xf32, #tpu.memory_space<any>>
      %c2_i32_95 = arith.constant 2 : i32
      %c0_i32_96 = arith.constant 0 : i32
      %117 = tpu.memref_slice %arg4[%c0_i32_91, %c2_i32_95, %c0_i32_96] : memref<2x16x128xf32, #tpu.memory_space<vmem>> -> memref<1x1x128xf32, #tpu.memory_space<vmem>>
      %118 = tpu.memref_squeeze %117 : memref<1x1x128xf32, #tpu.memory_space<vmem>> -> memref<1x128xf32, #tpu.memory_space<vmem>>
      %119 = tpu.memref_slice %arg5[%c0_i32_92, %c2_i32_93] : memref<2x16x!tpu.dma_semaphore, #tpu.memory_space<semaphore_mem>> -> memref<1x1x!tpu.dma_semaphore, #tpu.memory_space<semaphore_mem>>
      %120 = tpu.memref_squeeze %119 : memref<1x1x!tpu.dma_semaphore, #tpu.memory_space<semaphore_mem>> -> memref<!tpu.dma_semaphore, #tpu.memory_space<semaphore_mem>>
      tpu.enqueue_dma source(%116 : memref<1x128xf32, #tpu.memory_space<any>>) target(%118 : memref<1x128xf32, #tpu.memory_space<vmem>>) target_semaphore(%120 : memref<!tpu.dma_semaphore, #tpu.memory_space<semaphore_mem>>)
      %c3 = arith.constant 3 : index
      %121 = memref.load %arg1[%c3] : memref<16xi32, #tpu.memory_space<smem>>
      %c0_i32_97 = arith.constant 0 : i32
      %c0_i32_98 = arith.constant 0 : i32
      %c3_i32_99 = arith.constant 3 : i32
      %c0_i32_100 = arith.constant 0 : i32
      %122 = tpu.memref_slice %arg2[%121, %c0_i32_100] : memref<64x128xf32, #tpu.memory_space<any>> -> memref<1x128xf32, #tpu.memory_space<any>>
      %c3_i32_101 = arith.constant 3 : i32
      %c0_i32_102 = arith.constant 0 : i32
      %123 = tpu.memref_slice %arg4[%c0_i32_97, %c3_i32_101, %c0_i32_102] : memref<2x16x128xf32, #tpu.memory_space<vmem>> -> memref<1x1x128xf32, #tpu.memory_space<vmem>>
      %124 = tpu.memref_squeeze %123 : memref<1x1x128xf32, #tpu.memory_space<vmem>> -> memref<1x128xf32, #tpu.memory_space<vmem>>
      %125 = tpu.memref_slice %arg5[%c0_i32_98, %c3_i32_99] : memref<2x16x!tpu.dma_semaphore, #tpu.memory_space<semaphore_mem>> -> memref<1x1x!tpu.dma_semaphore, #tpu.memory_space<semaphore_mem>>
      %126 = tpu.memref_squeeze %125 : memref<1x1x!tpu.dma_semaphore, #tpu.memory_space<semaphore_mem>> -> memref<!tpu.dma_semaphore, #tpu.memory_space<semaphore_mem>>
      tpu.enqueue_dma source(%122 : memref<1x128xf32, #tpu.memory_space<any>>) target(%124 : memref<1x128xf32, #tpu.memory_space<vmem>>) target_semaphore(%126 : memref<!tpu.dma_semaphore, #tpu.memory_space<semaphore_mem>>)
      %c4 = arith.constant 4 : index
      %127 = memref.load %arg1[%c4] : memref<16xi32, #tpu.memory_space<smem>>
      %c0_i32_103 = arith.constant 0 : i32
      %c0_i32_104 = arith.constant 0 : i32
      %c4_i32_105 = arith.constant 4 : i32
      %c0_i32_106 = arith.constant 0 : i32
      %128 = tpu.memref_slice %arg2[%127, %c0_i32_106] : memref<64x128xf32, #tpu.memory_space<any>> -> memref<1x128xf32, #tpu.memory_space<any>>
      %c4_i32_107 = arith.constant 4 : i32
      %c0_i32_108 = arith.constant 0 : i32
      %129 = tpu.memref_slice %arg4[%c0_i32_103, %c4_i32_107, %c0_i32_108] : memref<2x16x128xf32, #tpu.memory_space<vmem>> -> memref<1x1x128xf32, #tpu.memory_space<vmem>>
      %130 = tpu.memref_squeeze %129 : memref<1x1x128xf32, #tpu.memory_space<vmem>> -> memref<1x128xf32, #tpu.memory_space<vmem>>
      %131 = tpu.memref_slice %arg5[%c0_i32_104, %c4_i32_105] : memref<2x16x!tpu.dma_semaphore, #tpu.memory_space<semaphore_mem>> -> memref<1x1x!tpu.dma_semaphore, #tpu.memory_space<semaphore_mem>>
      %132 = tpu.memref_squeeze %131 : memref<1x1x!tpu.dma_semaphore, #tpu.memory_space<semaphore_mem>> -> memref<!tpu.dma_semaphore, #tpu.memory_space<semaphore_mem>>
      tpu.enqueue_dma source(%128 : memref<1x128xf32, #tpu.memory_space<any>>) target(%130 : memref<1x128xf32, #tpu.memory_space<vmem>>) target_semaphore(%132 : memref<!tpu.dma_semaphore, #tpu.memory_space<semaphore_mem>>)
      %c5 = arith.constant 5 : index
      %133 = memref.load %arg1[%c5] : memref<16xi32, #tpu.memory_space<smem>>
      %c0_i32_109 = arith.constant 0 : i32
      %c0_i32_110 = arith.constant 0 : i32
      %c5_i32_111 = arith.constant 5 : i32
      %c0_i32_112 = arith.constant 0 : i32
      %134 = tpu.memref_slice %arg2[%133, %c0_i32_112] : memref<64x128xf32, #tpu.memory_space<any>> -> memref<1x128xf32, #tpu.memory_space<any>>
      %c5_i32_113 = arith.constant 5 : i32
      %c0_i32_114 = arith.constant 0 : i32
      %135 = tpu.memref_slice %arg4[%c0_i32_109, %c5_i32_113, %c0_i32_114] : memref<2x16x128xf32, #tpu.memory_space<vmem>> -> memref<1x1x128xf32, #tpu.memory_space<vmem>>
      %136 = tpu.memref_squeeze %135 : memref<1x1x128xf32, #tpu.memory_space<vmem>> -> memref<1x128xf32, #tpu.memory_space<vmem>>
      %137 = tpu.memref_slice %arg5[%c0_i32_110, %c5_i32_111] : memref<2x16x!tpu.dma_semaphore, #tpu.memory_space<semaphore_mem>> -> memref<1x1x!tpu.dma_semaphore, #tpu.memory_space<semaphore_mem>>
      %138 = tpu.memref_squeeze %137 : memref<1x1x!tpu.dma_semaphore, #tpu.memory_space<semaphore_mem>> -> memref<!tpu.dma_semaphore, #tpu.memory_space<semaphore_mem>>
      tpu.enqueue_dma source(%134 : memref<1x128xf32, #tpu.memory_space<any>>) target(%136 : memref<1x128xf32, #tpu.memory_space<vmem>>) target_semaphore(%138 : memref<!tpu.dma_semaphore, #tpu.memory_space<semaphore_mem>>)
      %c6 = arith.constant 6 : index
      %139 = memref.load %arg1[%c6] : memref<16xi32, #tpu.memory_space<smem>>
      %c0_i32_115 = arith.constant 0 : i32
      %c0_i32_116 = arith.constant 0 : i32
      %c6_i32_117 = arith.constant 6 : i32
      %c0_i32_118 = arith.constant 0 : i32
      %140 = tpu.memref_slice %arg2[%139, %c0_i32_118] : memref<64x128xf32, #tpu.memory_space<any>> -> memref<1x128xf32, #tpu.memory_space<any>>
      %c6_i32_119 = arith.constant 6 : i32
      %c0_i32_120 = arith.constant 0 : i32
      %141 = tpu.memref_slice %arg4[%c0_i32_115, %c6_i32_119, %c0_i32_120] : memref<2x16x128xf32, #tpu.memory_space<vmem>> -> memref<1x1x128xf32, #tpu.memory_space<vmem>>
      %142 = tpu.memref_squeeze %141 : memref<1x1x128xf32, #tpu.memory_space<vmem>> -> memref<1x128xf32, #tpu.memory_space<vmem>>
      %143 = tpu.memref_slice %arg5[%c0_i32_116, %c6_i32_117] : memref<2x16x!tpu.dma_semaphore, #tpu.memory_space<semaphore_mem>> -> memref<1x1x!tpu.dma_semaphore, #tpu.memory_space<semaphore_mem>>
      %144 = tpu.memref_squeeze %143 : memref<1x1x!tpu.dma_semaphore, #tpu.memory_space<semaphore_mem>> -> memref<!tpu.dma_semaphore, #tpu.memory_space<semaphore_mem>>
      tpu.enqueue_dma source(%140 : memref<1x128xf32, #tpu.memory_space<any>>) target(%142 : memref<1x128xf32, #tpu.memory_space<vmem>>) target_semaphore(%144 : memref<!tpu.dma_semaphore, #tpu.memory_space<semaphore_mem>>)
      %c7 = arith.constant 7 : index
      %145 = memref.load %arg1[%c7] : memref<16xi32, #tpu.memory_space<smem>>
      %c0_i32_121 = arith.constant 0 : i32
      %c0_i32_122 = arith.constant 0 : i32
      %c7_i32_123 = arith.constant 7 : i32
      %c0_i32_124 = arith.constant 0 : i32
      %146 = tpu.memref_slice %arg2[%145, %c0_i32_124] : memref<64x128xf32, #tpu.memory_space<any>> -> memref<1x128xf32, #tpu.memory_space<any>>
      %c7_i32_125 = arith.constant 7 : i32
      %c0_i32_126 = arith.constant 0 : i32
      %147 = tpu.memref_slice %arg4[%c0_i32_121, %c7_i32_125, %c0_i32_126] : memref<2x16x128xf32, #tpu.memory_space<vmem>> -> memref<1x1x128xf32, #tpu.memory_space<vmem>>
      %148 = tpu.memref_squeeze %147 : memref<1x1x128xf32, #tpu.memory_space<vmem>> -> memref<1x128xf32, #tpu.memory_space<vmem>>
      %149 = tpu.memref_slice %arg5[%c0_i32_122, %c7_i32_123] : memref<2x16x!tpu.dma_semaphore, #tpu.memory_space<semaphore_mem>> -> memref<1x1x!tpu.dma_semaphore, #tpu.memory_space<semaphore_mem>>
      %150 = tpu.memref_squeeze %149 : memref<1x1x!tpu.dma_semaphore, #tpu.memory_space<semaphore_mem>> -> memref<!tpu.dma_semaphore, #tpu.memory_space<semaphore_mem>>
      tpu.enqueue_dma source(%146 : memref<1x128xf32, #tpu.memory_space<any>>) target(%148 : memref<1x128xf32, #tpu.memory_space<vmem>>) target_semaphore(%150 : memref<!tpu.dma_semaphore, #tpu.memory_space<semaphore_mem>>)
      %c8 = arith.constant 8 : index
      %151 = memref.load %arg1[%c8] : memref<16xi32, #tpu.memory_space<smem>>
      %c0_i32_127 = arith.constant 0 : i32
      %c0_i32_128 = arith.constant 0 : i32
      %c8_i32_129 = arith.constant 8 : i32
      %c0_i32_130 = arith.constant 0 : i32
      %152 = tpu.memref_slice %arg2[%151, %c0_i32_130] : memref<64x128xf32, #tpu.memory_space<any>> -> memref<1x128xf32, #tpu.memory_space<any>>
      %c8_i32_131 = arith.constant 8 : i32
      %c0_i32_132 = arith.constant 0 : i32
      %153 = tpu.memref_slice %arg4[%c0_i32_127, %c8_i32_131, %c0_i32_132] : memref<2x16x128xf32, #tpu.memory_space<vmem>> -> memref<1x1x128xf32, #tpu.memory_space<vmem>>
      %154 = tpu.memref_squeeze %153 : memref<1x1x128xf32, #tpu.memory_space<vmem>> -> memref<1x128xf32, #tpu.memory_space<vmem>>
      %155 = tpu.memref_slice %arg5[%c0_i32_128, %c8_i32_129] : memref<2x16x!tpu.dma_semaphore, #tpu.memory_space<semaphore_mem>> -> memref<1x1x!tpu.dma_semaphore, #tpu.memory_space<semaphore_mem>>
      %156 = tpu.memref_squeeze %155 : memref<1x1x!tpu.dma_semaphore, #tpu.memory_space<semaphore_mem>> -> memref<!tpu.dma_semaphore, #tpu.memory_space<semaphore_mem>>
      tpu.enqueue_dma source(%152 : memref<1x128xf32, #tpu.memory_space<any>>) target(%154 : memref<1x128xf32, #tpu.memory_space<vmem>>) target_semaphore(%156 : memref<!tpu.dma_semaphore, #tpu.memory_space<semaphore_mem>>)
      %c9 = arith.constant 9 : index
      %157 = memref.load %arg1[%c9] : memref<16xi32, #tpu.memory_space<smem>>
      %c0_i32_133 = arith.constant 0 : i32
      %c0_i32_134 = arith.constant 0 : i32
      %c9_i32_135 = arith.constant 9 : i32
      %c0_i32_136 = arith.constant 0 : i32
      %158 = tpu.memref_slice %arg2[%157, %c0_i32_136] : memref<64x128xf32, #tpu.memory_space<any>> -> memref<1x128xf32, #tpu.memory_space<any>>
      %c9_i32_137 = arith.constant 9 : i32
      %c0_i32_138 = arith.constant 0 : i32
      %159 = tpu.memref_slice %arg4[%c0_i32_133, %c9_i32_137, %c0_i32_138] : memref<2x16x128xf32, #tpu.memory_space<vmem>> -> memref<1x1x128xf32, #tpu.memory_space<vmem>>
      %160 = tpu.memref_squeeze %159 : memref<1x1x128xf32, #tpu.memory_space<vmem>> -> memref<1x128xf32, #tpu.memory_space<vmem>>
      %161 = tpu.memref_slice %arg5[%c0_i32_134, %c9_i32_135] : memref<2x16x!tpu.dma_semaphore, #tpu.memory_space<semaphore_mem>> -> memref<1x1x!tpu.dma_semaphore, #tpu.memory_space<semaphore_mem>>
      %162 = tpu.memref_squeeze %161 : memref<1x1x!tpu.dma_semaphore, #tpu.memory_space<semaphore_mem>> -> memref<!tpu.dma_semaphore, #tpu.memory_space<semaphore_mem>>
      tpu.enqueue_dma source(%158 : memref<1x128xf32, #tpu.memory_space<any>>) target(%160 : memref<1x128xf32, #tpu.memory_space<vmem>>) target_semaphore(%162 : memref<!tpu.dma_semaphore, #tpu.memory_space<semaphore_mem>>)
      %c10 = arith.constant 10 : index
      %163 = memref.load %arg1[%c10] : memref<16xi32, #tpu.memory_space<smem>>
      %c0_i32_139 = arith.constant 0 : i32
      %c0_i32_140 = arith.constant 0 : i32
      %c10_i32_141 = arith.constant 10 : i32
      %c0_i32_142 = arith.constant 0 : i32
      %164 = tpu.memref_slice %arg2[%163, %c0_i32_142] : memref<64x128xf32, #tpu.memory_space<any>> -> memref<1x128xf32, #tpu.memory_space<any>>
      %c10_i32_143 = arith.constant 10 : i32
      %c0_i32_144 = arith.constant 0 : i32
      %165 = tpu.memref_slice %arg4[%c0_i32_139, %c10_i32_143, %c0_i32_144] : memref<2x16x128xf32, #tpu.memory_space<vmem>> -> memref<1x1x128xf32, #tpu.memory_space<vmem>>
      %166 = tpu.memref_squeeze %165 : memref<1x1x128xf32, #tpu.memory_space<vmem>> -> memref<1x128xf32, #tpu.memory_space<vmem>>
      %167 = tpu.memref_slice %arg5[%c0_i32_140, %c10_i32_141] : memref<2x16x!tpu.dma_semaphore, #tpu.memory_space<semaphore_mem>> -> memref<1x1x!tpu.dma_semaphore, #tpu.memory_space<semaphore_mem>>
      %168 = tpu.memref_squeeze %167 : memref<1x1x!tpu.dma_semaphore, #tpu.memory_space<semaphore_mem>> -> memref<!tpu.dma_semaphore, #tpu.memory_space<semaphore_mem>>
      tpu.enqueue_dma source(%164 : memref<1x128xf32, #tpu.memory_space<any>>) target(%166 : memref<1x128xf32, #tpu.memory_space<vmem>>) target_semaphore(%168 : memref<!tpu.dma_semaphore, #tpu.memory_space<semaphore_mem>>)
      %c11 = arith.constant 11 : index
      %169 = memref.load %arg1[%c11] : memref<16xi32, #tpu.memory_space<smem>>
      %c0_i32_145 = arith.constant 0 : i32
      %c0_i32_146 = arith.constant 0 : i32
      %c11_i32_147 = arith.constant 11 : i32
      %c0_i32_148 = arith.constant 0 : i32
      %170 = tpu.memref_slice %arg2[%169, %c0_i32_148] : memref<64x128xf32, #tpu.memory_space<any>> -> memref<1x128xf32, #tpu.memory_space<any>>
      %c11_i32_149 = arith.constant 11 : i32
      %c0_i32_150 = arith.constant 0 : i32
      %171 = tpu.memref_slice %arg4[%c0_i32_145, %c11_i32_149, %c0_i32_150] : memref<2x16x128xf32, #tpu.memory_space<vmem>> -> memref<1x1x128xf32, #tpu.memory_space<vmem>>
      %172 = tpu.memref_squeeze %171 : memref<1x1x128xf32, #tpu.memory_space<vmem>> -> memref<1x128xf32, #tpu.memory_space<vmem>>
      %173 = tpu.memref_slice %arg5[%c0_i32_146, %c11_i32_147] : memref<2x16x!tpu.dma_semaphore, #tpu.memory_space<semaphore_mem>> -> memref<1x1x!tpu.dma_semaphore, #tpu.memory_space<semaphore_mem>>
      %174 = tpu.memref_squeeze %173 : memref<1x1x!tpu.dma_semaphore, #tpu.memory_space<semaphore_mem>> -> memref<!tpu.dma_semaphore, #tpu.memory_space<semaphore_mem>>
      tpu.enqueue_dma source(%170 : memref<1x128xf32, #tpu.memory_space<any>>) target(%172 : memref<1x128xf32, #tpu.memory_space<vmem>>) target_semaphore(%174 : memref<!tpu.dma_semaphore, #tpu.memory_space<semaphore_mem>>)
      %c12 = arith.constant 12 : index
      %175 = memref.load %arg1[%c12] : memref<16xi32, #tpu.memory_space<smem>>
      %c0_i32_151 = arith.constant 0 : i32
      %c0_i32_152 = arith.constant 0 : i32
      %c12_i32_153 = arith.constant 12 : i32
      %c0_i32_154 = arith.constant 0 : i32
      %176 = tpu.memref_slice %arg2[%175, %c0_i32_154] : memref<64x128xf32, #tpu.memory_space<any>> -> memref<1x128xf32, #tpu.memory_space<any>>
      %c12_i32_155 = arith.constant 12 : i32
      %c0_i32_156 = arith.constant 0 : i32
      %177 = tpu.memref_slice %arg4[%c0_i32_151, %c12_i32_155, %c0_i32_156] : memref<2x16x128xf32, #tpu.memory_space<vmem>> -> memref<1x1x128xf32, #tpu.memory_space<vmem>>
      %178 = tpu.memref_squeeze %177 : memref<1x1x128xf32, #tpu.memory_space<vmem>> -> memref<1x128xf32, #tpu.memory_space<vmem>>
      %179 = tpu.memref_slice %arg5[%c0_i32_152, %c12_i32_153] : memref<2x16x!tpu.dma_semaphore, #tpu.memory_space<semaphore_mem>> -> memref<1x1x!tpu.dma_semaphore, #tpu.memory_space<semaphore_mem>>
      %180 = tpu.memref_squeeze %179 : memref<1x1x!tpu.dma_semaphore, #tpu.memory_space<semaphore_mem>> -> memref<!tpu.dma_semaphore, #tpu.memory_space<semaphore_mem>>
      tpu.enqueue_dma source(%176 : memref<1x128xf32, #tpu.memory_space<any>>) target(%178 : memref<1x128xf32, #tpu.memory_space<vmem>>) target_semaphore(%180 : memref<!tpu.dma_semaphore, #tpu.memory_space<semaphore_mem>>)
      %c13 = arith.constant 13 : index
      %181 = memref.load %arg1[%c13] : memref<16xi32, #tpu.memory_space<smem>>
      %c0_i32_157 = arith.constant 0 : i32
      %c0_i32_158 = arith.constant 0 : i32
      %c13_i32_159 = arith.constant 13 : i32
      %c0_i32_160 = arith.constant 0 : i32
      %182 = tpu.memref_slice %arg2[%181, %c0_i32_160] : memref<64x128xf32, #tpu.memory_space<any>> -> memref<1x128xf32, #tpu.memory_space<any>>
      %c13_i32_161 = arith.constant 13 : i32
      %c0_i32_162 = arith.constant 0 : i32
      %183 = tpu.memref_slice %arg4[%c0_i32_157, %c13_i32_161, %c0_i32_162] : memref<2x16x128xf32, #tpu.memory_space<vmem>> -> memref<1x1x128xf32, #tpu.memory_space<vmem>>
      %184 = tpu.memref_squeeze %183 : memref<1x1x128xf32, #tpu.memory_space<vmem>> -> memref<1x128xf32, #tpu.memory_space<vmem>>
      %185 = tpu.memref_slice %arg5[%c0_i32_158, %c13_i32_159] : memref<2x16x!tpu.dma_semaphore, #tpu.memory_space<semaphore_mem>> -> memref<1x1x!tpu.dma_semaphore, #tpu.memory_space<semaphore_mem>>
      %186 = tpu.memref_squeeze %185 : memref<1x1x!tpu.dma_semaphore, #tpu.memory_space<semaphore_mem>> -> memref<!tpu.dma_semaphore, #tpu.memory_space<semaphore_mem>>
      tpu.enqueue_dma source(%182 : memref<1x128xf32, #tpu.memory_space<any>>) target(%184 : memref<1x128xf32, #tpu.memory_space<vmem>>) target_semaphore(%186 : memref<!tpu.dma_semaphore, #tpu.memory_space<semaphore_mem>>)
      %c14 = arith.constant 14 : index
      %187 = memref.load %arg1[%c14] : memref<16xi32, #tpu.memory_space<smem>>
      %c0_i32_163 = arith.constant 0 : i32
      %c0_i32_164 = arith.constant 0 : i32
      %c14_i32_165 = arith.constant 14 : i32
      %c0_i32_166 = arith.constant 0 : i32
      %188 = tpu.memref_slice %arg2[%187, %c0_i32_166] : memref<64x128xf32, #tpu.memory_space<any>> -> memref<1x128xf32, #tpu.memory_space<any>>
      %c14_i32_167 = arith.constant 14 : i32
      %c0_i32_168 = arith.constant 0 : i32
      %189 = tpu.memref_slice %arg4[%c0_i32_163, %c14_i32_167, %c0_i32_168] : memref<2x16x128xf32, #tpu.memory_space<vmem>> -> memref<1x1x128xf32, #tpu.memory_space<vmem>>
      %190 = tpu.memref_squeeze %189 : memref<1x1x128xf32, #tpu.memory_space<vmem>> -> memref<1x128xf32, #tpu.memory_space<vmem>>
      %191 = tpu.memref_slice %arg5[%c0_i32_164, %c14_i32_165] : memref<2x16x!tpu.dma_semaphore, #tpu.memory_space<semaphore_mem>> -> memref<1x1x!tpu.dma_semaphore, #tpu.memory_space<semaphore_mem>>
      %192 = tpu.memref_squeeze %191 : memref<1x1x!tpu.dma_semaphore, #tpu.memory_space<semaphore_mem>> -> memref<!tpu.dma_semaphore, #tpu.memory_space<semaphore_mem>>
      tpu.enqueue_dma source(%188 : memref<1x128xf32, #tpu.memory_space<any>>) target(%190 : memref<1x128xf32, #tpu.memory_space<vmem>>) target_semaphore(%192 : memref<!tpu.dma_semaphore, #tpu.memory_space<semaphore_mem>>)
      %c15 = arith.constant 15 : index
      %193 = memref.load %arg1[%c15] : memref<16xi32, #tpu.memory_space<smem>>
      %c0_i32_169 = arith.constant 0 : i32
      %c0_i32_170 = arith.constant 0 : i32
      %c15_i32_171 = arith.constant 15 : i32
      %c0_i32_172 = arith.constant 0 : i32
      %194 = tpu.memref_slice %arg2[%193, %c0_i32_172] : memref<64x128xf32, #tpu.memory_space<any>> -> memref<1x128xf32, #tpu.memory_space<any>>
      %c15_i32_173 = arith.constant 15 : i32
      %c0_i32_174 = arith.constant 0 : i32
      %195 = tpu.memref_slice %arg4[%c0_i32_169, %c15_i32_173, %c0_i32_174] : memref<2x16x128xf32, #tpu.memory_space<vmem>> -> memref<1x1x128xf32, #tpu.memory_space<vmem>>
      %196 = tpu.memref_squeeze %195 : memref<1x1x128xf32, #tpu.memory_space<vmem>> -> memref<1x128xf32, #tpu.memory_space<vmem>>
      %197 = tpu.memref_slice %arg5[%c0_i32_170, %c15_i32_171] : memref<2x16x!tpu.dma_semaphore, #tpu.memory_space<semaphore_mem>> -> memref<1x1x!tpu.dma_semaphore, #tpu.memory_space<semaphore_mem>>
      %198 = tpu.memref_squeeze %197 : memref<1x1x!tpu.dma_semaphore, #tpu.memory_space<semaphore_mem>> -> memref<!tpu.dma_semaphore, #tpu.memory_space<semaphore_mem>>
      tpu.enqueue_dma source(%194 : memref<1x128xf32, #tpu.memory_space<any>>) target(%196 : memref<1x128xf32, #tpu.memory_space<vmem>>) target_semaphore(%198 : memref<!tpu.dma_semaphore, #tpu.memory_space<semaphore_mem>>)
    } else {
    }
    %c1_i32_5 = arith.constant 1 : i32
    %13 = arith.addi %arg0, %c1_i32_5 : i32
    %c1_i32_6 = arith.constant 1 : i32
    %14 = arith.cmpi slt, %13, %c1_i32_6 : i32
    %15 = arith.extui %14 : i1 to i32
    %c0_i32_7 = arith.constant 0 : i32
    %16 = arith.cmpi ne, %15, %c0_i32_7 : i32
    scf.if %16 {
      %c1_i32_78 = arith.constant 1 : i32
      %103 = arith.addi %arg0, %c1_i32_78 : i32
      %c1_i32_79 = arith.constant 1 : i32
      %104 = arith.addi %arg0, %c1_i32_79 : i32
      %c2_i32_80 = arith.constant 2 : i32
      %c0_i32_81 = arith.constant 0 : i32
      %105 = arith.cmpi eq, %c2_i32_80, %c0_i32_81 : i32
      %c1_i32_82 = arith.constant 1 : i32
      %106 = arith.select %105, %c1_i32_82, %c2_i32_80 : i32
      %107 = arith.remsi %104, %106 : i32
      %c0_i32_83 = arith.constant 0 : i32
      %108 = arith.cmpi ne, %107, %c0_i32_83 : i32
      %c0_i32_84 = arith.constant 0 : i32
      %109 = arith.cmpi slt, %107, %c0_i32_84 : i32
      %c0_i32_85 = arith.constant 0 : i32
      %110 = arith.cmpi slt, %106, %c0_i32_85 : i32
      %111 = arith.xori %109, %110 : i1
      %112 = arith.andi %111, %108 : i1
      %113 = arith.addi %107, %106 : i32
      %114 = arith.select %112, %113, %107 : i32
      %c16_i32 = arith.constant 16 : i32
      %115 = arith.muli %103, %c16_i32 : i32
      %c0_i32_86 = arith.constant 0 : i32
      %116 = arith.addi %115, %c0_i32_86 : i32
      %117 = arith.index_cast %116 : i32 to index
      %118 = memref.load %arg1[%117] : memref<16xi32, #tpu.memory_space<smem>>
      %c0_i32_87 = arith.constant 0 : i32
      %c0_i32_88 = arith.constant 0 : i32
      %119 = tpu.memref_slice %arg2[%118, %c0_i32_88] : memref<64x128xf32, #tpu.memory_space<any>> -> memref<1x128xf32, #tpu.memory_space<any>>
      %c0_i32_89 = arith.constant 0 : i32
      %c0_i32_90 = arith.constant 0 : i32
      %120 = tpu.memref_slice %arg4[%114, %c0_i32_89, %c0_i32_90] : memref<2x16x128xf32, #tpu.memory_space<vmem>> -> memref<1x1x128xf32, #tpu.memory_space<vmem>>
      %121 = tpu.memref_squeeze %120 : memref<1x1x128xf32, #tpu.memory_space<vmem>> -> memref<1x128xf32, #tpu.memory_space<vmem>>
      %122 = tpu.memref_slice %arg5[%114, %c0_i32_87] : memref<2x16x!tpu.dma_semaphore, #tpu.memory_space<semaphore_mem>> -> memref<1x1x!tpu.dma_semaphore, #tpu.memory_space<semaphore_mem>>
      %123 = tpu.memref_squeeze %122 : memref<1x1x!tpu.dma_semaphore, #tpu.memory_space<semaphore_mem>> -> memref<!tpu.dma_semaphore, #tpu.memory_space<semaphore_mem>>
      tpu.enqueue_dma source(%119 : memref<1x128xf32, #tpu.memory_space<any>>) target(%121 : memref<1x128xf32, #tpu.memory_space<vmem>>) target_semaphore(%123 : memref<!tpu.dma_semaphore, #tpu.memory_space<semaphore_mem>>)
      %c1_i32_91 = arith.constant 1 : i32
      %124 = arith.addi %115, %c1_i32_91 : i32
      %125 = arith.index_cast %124 : i32 to index
      %126 = memref.load %arg1[%125] : memref<16xi32, #tpu.memory_space<smem>>
      %c1_i32_92 = arith.constant 1 : i32
      %c0_i32_93 = arith.constant 0 : i32
      %127 = tpu.memref_slice %arg2[%126, %c0_i32_93] : memref<64x128xf32, #tpu.memory_space<any>> -> memref<1x128xf32, #tpu.memory_space<any>>
      %c1_i32_94 = arith.constant 1 : i32
      %c0_i32_95 = arith.constant 0 : i32
      %128 = tpu.memref_slice %arg4[%114, %c1_i32_94, %c0_i32_95] : memref<2x16x128xf32, #tpu.memory_space<vmem>> -> memref<1x1x128xf32, #tpu.memory_space<vmem>>
      %129 = tpu.memref_squeeze %128 : memref<1x1x128xf32, #tpu.memory_space<vmem>> -> memref<1x128xf32, #tpu.memory_space<vmem>>
      %130 = tpu.memref_slice %arg5[%114, %c1_i32_92] : memref<2x16x!tpu.dma_semaphore, #tpu.memory_space<semaphore_mem>> -> memref<1x1x!tpu.dma_semaphore, #tpu.memory_space<semaphore_mem>>
      %131 = tpu.memref_squeeze %130 : memref<1x1x!tpu.dma_semaphore, #tpu.memory_space<semaphore_mem>> -> memref<!tpu.dma_semaphore, #tpu.memory_space<semaphore_mem>>
      tpu.enqueue_dma source(%127 : memref<1x128xf32, #tpu.memory_space<any>>) target(%129 : memref<1x128xf32, #tpu.memory_space<vmem>>) target_semaphore(%131 : memref<!tpu.dma_semaphore, #tpu.memory_space<semaphore_mem>>)
      %c2_i32_96 = arith.constant 2 : i32
      %132 = arith.addi %115, %c2_i32_96 : i32
      %133 = arith.index_cast %132 : i32 to index
      %134 = memref.load %arg1[%133] : memref<16xi32, #tpu.memory_space<smem>>
      %c2_i32_97 = arith.constant 2 : i32
      %c0_i32_98 = arith.constant 0 : i32
      %135 = tpu.memref_slice %arg2[%134, %c0_i32_98] : memref<64x128xf32, #tpu.memory_space<any>> -> memref<1x128xf32, #tpu.memory_space<any>>
      %c2_i32_99 = arith.constant 2 : i32
      %c0_i32_100 = arith.constant 0 : i32
      %136 = tpu.memref_slice %arg4[%114, %c2_i32_99, %c0_i32_100] : memref<2x16x128xf32, #tpu.memory_space<vmem>> -> memref<1x1x128xf32, #tpu.memory_space<vmem>>
      %137 = tpu.memref_squeeze %136 : memref<1x1x128xf32, #tpu.memory_space<vmem>> -> memref<1x128xf32, #tpu.memory_space<vmem>>
      %138 = tpu.memref_slice %arg5[%114, %c2_i32_97] : memref<2x16x!tpu.dma_semaphore, #tpu.memory_space<semaphore_mem>> -> memref<1x1x!tpu.dma_semaphore, #tpu.memory_space<semaphore_mem>>
      %139 = tpu.memref_squeeze %138 : memref<1x1x!tpu.dma_semaphore, #tpu.memory_space<semaphore_mem>> -> memref<!tpu.dma_semaphore, #tpu.memory_space<semaphore_mem>>
      tpu.enqueue_dma source(%135 : memref<1x128xf32, #tpu.memory_space<any>>) target(%137 : memref<1x128xf32, #tpu.memory_space<vmem>>) target_semaphore(%139 : memref<!tpu.dma_semaphore, #tpu.memory_space<semaphore_mem>>)
      %c3_i32_101 = arith.constant 3 : i32
      %140 = arith.addi %115, %c3_i32_101 : i32
      %141 = arith.index_cast %140 : i32 to index
      %142 = memref.load %arg1[%141] : memref<16xi32, #tpu.memory_space<smem>>
      %c3_i32_102 = arith.constant 3 : i32
      %c0_i32_103 = arith.constant 0 : i32
      %143 = tpu.memref_slice %arg2[%142, %c0_i32_103] : memref<64x128xf32, #tpu.memory_space<any>> -> memref<1x128xf32, #tpu.memory_space<any>>
      %c3_i32_104 = arith.constant 3 : i32
      %c0_i32_105 = arith.constant 0 : i32
      %144 = tpu.memref_slice %arg4[%114, %c3_i32_104, %c0_i32_105] : memref<2x16x128xf32, #tpu.memory_space<vmem>> -> memref<1x1x128xf32, #tpu.memory_space<vmem>>
      %145 = tpu.memref_squeeze %144 : memref<1x1x128xf32, #tpu.memory_space<vmem>> -> memref<1x128xf32, #tpu.memory_space<vmem>>
      %146 = tpu.memref_slice %arg5[%114, %c3_i32_102] : memref<2x16x!tpu.dma_semaphore, #tpu.memory_space<semaphore_mem>> -> memref<1x1x!tpu.dma_semaphore, #tpu.memory_space<semaphore_mem>>
      %147 = tpu.memref_squeeze %146 : memref<1x1x!tpu.dma_semaphore, #tpu.memory_space<semaphore_mem>> -> memref<!tpu.dma_semaphore, #tpu.memory_space<semaphore_mem>>
      tpu.enqueue_dma source(%143 : memref<1x128xf32, #tpu.memory_space<any>>) target(%145 : memref<1x128xf32, #tpu.memory_space<vmem>>) target_semaphore(%147 : memref<!tpu.dma_semaphore, #tpu.memory_space<semaphore_mem>>)
      %c4_i32_106 = arith.constant 4 : i32
      %148 = arith.addi %115, %c4_i32_106 : i32
      %149 = arith.index_cast %148 : i32 to index
      %150 = memref.load %arg1[%149] : memref<16xi32, #tpu.memory_space<smem>>
      %c4_i32_107 = arith.constant 4 : i32
      %c0_i32_108 = arith.constant 0 : i32
      %151 = tpu.memref_slice %arg2[%150, %c0_i32_108] : memref<64x128xf32, #tpu.memory_space<any>> -> memref<1x128xf32, #tpu.memory_space<any>>
      %c4_i32_109 = arith.constant 4 : i32
      %c0_i32_110 = arith.constant 0 : i32
      %152 = tpu.memref_slice %arg4[%114, %c4_i32_109, %c0_i32_110] : memref<2x16x128xf32, #tpu.memory_space<vmem>> -> memref<1x1x128xf32, #tpu.memory_space<vmem>>
      %153 = tpu.memref_squeeze %152 : memref<1x1x128xf32, #tpu.memory_space<vmem>> -> memref<1x128xf32, #tpu.memory_space<vmem>>
      %154 = tpu.memref_slice %arg5[%114, %c4_i32_107] : memref<2x16x!tpu.dma_semaphore, #tpu.memory_space<semaphore_mem>> -> memref<1x1x!tpu.dma_semaphore, #tpu.memory_space<semaphore_mem>>
      %155 = tpu.memref_squeeze %154 : memref<1x1x!tpu.dma_semaphore, #tpu.memory_space<semaphore_mem>> -> memref<!tpu.dma_semaphore, #tpu.memory_space<semaphore_mem>>
      tpu.enqueue_dma source(%151 : memref<1x128xf32, #tpu.memory_space<any>>) target(%153 : memref<1x128xf32, #tpu.memory_space<vmem>>) target_semaphore(%155 : memref<!tpu.dma_semaphore, #tpu.memory_space<semaphore_mem>>)
      %c5_i32_111 = arith.constant 5 : i32
      %156 = arith.addi %115, %c5_i32_111 : i32
      %157 = arith.index_cast %156 : i32 to index
      %158 = memref.load %arg1[%157] : memref<16xi32, #tpu.memory_space<smem>>
      %c5_i32_112 = arith.constant 5 : i32
      %c0_i32_113 = arith.constant 0 : i32
      %159 = tpu.memref_slice %arg2[%158, %c0_i32_113] : memref<64x128xf32, #tpu.memory_space<any>> -> memref<1x128xf32, #tpu.memory_space<any>>
      %c5_i32_114 = arith.constant 5 : i32
      %c0_i32_115 = arith.constant 0 : i32
      %160 = tpu.memref_slice %arg4[%114, %c5_i32_114, %c0_i32_115] : memref<2x16x128xf32, #tpu.memory_space<vmem>> -> memref<1x1x128xf32, #tpu.memory_space<vmem>>
      %161 = tpu.memref_squeeze %160 : memref<1x1x128xf32, #tpu.memory_space<vmem>> -> memref<1x128xf32, #tpu.memory_space<vmem>>
      %162 = tpu.memref_slice %arg5[%114, %c5_i32_112] : memref<2x16x!tpu.dma_semaphore, #tpu.memory_space<semaphore_mem>> -> memref<1x1x!tpu.dma_semaphore, #tpu.memory_space<semaphore_mem>>
      %163 = tpu.memref_squeeze %162 : memref<1x1x!tpu.dma_semaphore, #tpu.memory_space<semaphore_mem>> -> memref<!tpu.dma_semaphore, #tpu.memory_space<semaphore_mem>>
      tpu.enqueue_dma source(%159 : memref<1x128xf32, #tpu.memory_space<any>>) target(%161 : memref<1x128xf32, #tpu.memory_space<vmem>>) target_semaphore(%163 : memref<!tpu.dma_semaphore, #tpu.memory_space<semaphore_mem>>)
      %c6_i32_116 = arith.constant 6 : i32
      %164 = arith.addi %115, %c6_i32_116 : i32
      %165 = arith.index_cast %164 : i32 to index
      %166 = memref.load %arg1[%165] : memref<16xi32, #tpu.memory_space<smem>>
      %c6_i32_117 = arith.constant 6 : i32
      %c0_i32_118 = arith.constant 0 : i32
      %167 = tpu.memref_slice %arg2[%166, %c0_i32_118] : memref<64x128xf32, #tpu.memory_space<any>> -> memref<1x128xf32, #tpu.memory_space<any>>
      %c6_i32_119 = arith.constant 6 : i32
      %c0_i32_120 = arith.constant 0 : i32
      %168 = tpu.memref_slice %arg4[%114, %c6_i32_119, %c0_i32_120] : memref<2x16x128xf32, #tpu.memory_space<vmem>> -> memref<1x1x128xf32, #tpu.memory_space<vmem>>
      %169 = tpu.memref_squeeze %168 : memref<1x1x128xf32, #tpu.memory_space<vmem>> -> memref<1x128xf32, #tpu.memory_space<vmem>>
      %170 = tpu.memref_slice %arg5[%114, %c6_i32_117] : memref<2x16x!tpu.dma_semaphore, #tpu.memory_space<semaphore_mem>> -> memref<1x1x!tpu.dma_semaphore, #tpu.memory_space<semaphore_mem>>
      %171 = tpu.memref_squeeze %170 : memref<1x1x!tpu.dma_semaphore, #tpu.memory_space<semaphore_mem>> -> memref<!tpu.dma_semaphore, #tpu.memory_space<semaphore_mem>>
      tpu.enqueue_dma source(%167 : memref<1x128xf32, #tpu.memory_space<any>>) target(%169 : memref<1x128xf32, #tpu.memory_space<vmem>>) target_semaphore(%171 : memref<!tpu.dma_semaphore, #tpu.memory_space<semaphore_mem>>)
      %c7_i32_121 = arith.constant 7 : i32
      %172 = arith.addi %115, %c7_i32_121 : i32
      %173 = arith.index_cast %172 : i32 to index
      %174 = memref.load %arg1[%173] : memref<16xi32, #tpu.memory_space<smem>>
      %c7_i32_122 = arith.constant 7 : i32
      %c0_i32_123 = arith.constant 0 : i32
      %175 = tpu.memref_slice %arg2[%174, %c0_i32_123] : memref<64x128xf32, #tpu.memory_space<any>> -> memref<1x128xf32, #tpu.memory_space<any>>
      %c7_i32_124 = arith.constant 7 : i32
      %c0_i32_125 = arith.constant 0 : i32
      %176 = tpu.memref_slice %arg4[%114, %c7_i32_124, %c0_i32_125] : memref<2x16x128xf32, #tpu.memory_space<vmem>> -> memref<1x1x128xf32, #tpu.memory_space<vmem>>
      %177 = tpu.memref_squeeze %176 : memref<1x1x128xf32, #tpu.memory_space<vmem>> -> memref<1x128xf32, #tpu.memory_space<vmem>>
      %178 = tpu.memref_slice %arg5[%114, %c7_i32_122] : memref<2x16x!tpu.dma_semaphore, #tpu.memory_space<semaphore_mem>> -> memref<1x1x!tpu.dma_semaphore, #tpu.memory_space<semaphore_mem>>
      %179 = tpu.memref_squeeze %178 : memref<1x1x!tpu.dma_semaphore, #tpu.memory_space<semaphore_mem>> -> memref<!tpu.dma_semaphore, #tpu.memory_space<semaphore_mem>>
      tpu.enqueue_dma source(%175 : memref<1x128xf32, #tpu.memory_space<any>>) target(%177 : memref<1x128xf32, #tpu.memory_space<vmem>>) target_semaphore(%179 : memref<!tpu.dma_semaphore, #tpu.memory_space<semaphore_mem>>)
      %c8_i32_126 = arith.constant 8 : i32
      %180 = arith.addi %115, %c8_i32_126 : i32
      %181 = arith.index_cast %180 : i32 to index
      %182 = memref.load %arg1[%181] : memref<16xi32, #tpu.memory_space<smem>>
      %c8_i32_127 = arith.constant 8 : i32
      %c0_i32_128 = arith.constant 0 : i32
      %183 = tpu.memref_slice %arg2[%182, %c0_i32_128] : memref<64x128xf32, #tpu.memory_space<any>> -> memref<1x128xf32, #tpu.memory_space<any>>
      %c8_i32_129 = arith.constant 8 : i32
      %c0_i32_130 = arith.constant 0 : i32
      %184 = tpu.memref_slice %arg4[%114, %c8_i32_129, %c0_i32_130] : memref<2x16x128xf32, #tpu.memory_space<vmem>> -> memref<1x1x128xf32, #tpu.memory_space<vmem>>
      %185 = tpu.memref_squeeze %184 : memref<1x1x128xf32, #tpu.memory_space<vmem>> -> memref<1x128xf32, #tpu.memory_space<vmem>>
      %186 = tpu.memref_slice %arg5[%114, %c8_i32_127] : memref<2x16x!tpu.dma_semaphore, #tpu.memory_space<semaphore_mem>> -> memref<1x1x!tpu.dma_semaphore, #tpu.memory_space<semaphore_mem>>
      %187 = tpu.memref_squeeze %186 : memref<1x1x!tpu.dma_semaphore, #tpu.memory_space<semaphore_mem>> -> memref<!tpu.dma_semaphore, #tpu.memory_space<semaphore_mem>>
      tpu.enqueue_dma source(%183 : memref<1x128xf32, #tpu.memory_space<any>>) target(%185 : memref<1x128xf32, #tpu.memory_space<vmem>>) target_semaphore(%187 : memref<!tpu.dma_semaphore, #tpu.memory_space<semaphore_mem>>)
      %c9_i32_131 = arith.constant 9 : i32
      %188 = arith.addi %115, %c9_i32_131 : i32
      %189 = arith.index_cast %188 : i32 to index
      %190 = memref.load %arg1[%189] : memref<16xi32, #tpu.memory_space<smem>>
      %c9_i32_132 = arith.constant 9 : i32
      %c0_i32_133 = arith.constant 0 : i32
      %191 = tpu.memref_slice %arg2[%190, %c0_i32_133] : memref<64x128xf32, #tpu.memory_space<any>> -> memref<1x128xf32, #tpu.memory_space<any>>
      %c9_i32_134 = arith.constant 9 : i32
      %c0_i32_135 = arith.constant 0 : i32
      %192 = tpu.memref_slice %arg4[%114, %c9_i32_134, %c0_i32_135] : memref<2x16x128xf32, #tpu.memory_space<vmem>> -> memref<1x1x128xf32, #tpu.memory_space<vmem>>
      %193 = tpu.memref_squeeze %192 : memref<1x1x128xf32, #tpu.memory_space<vmem>> -> memref<1x128xf32, #tpu.memory_space<vmem>>
      %194 = tpu.memref_slice %arg5[%114, %c9_i32_132] : memref<2x16x!tpu.dma_semaphore, #tpu.memory_space<semaphore_mem>> -> memref<1x1x!tpu.dma_semaphore, #tpu.memory_space<semaphore_mem>>
      %195 = tpu.memref_squeeze %194 : memref<1x1x!tpu.dma_semaphore, #tpu.memory_space<semaphore_mem>> -> memref<!tpu.dma_semaphore, #tpu.memory_space<semaphore_mem>>
      tpu.enqueue_dma source(%191 : memref<1x128xf32, #tpu.memory_space<any>>) target(%193 : memref<1x128xf32, #tpu.memory_space<vmem>>) target_semaphore(%195 : memref<!tpu.dma_semaphore, #tpu.memory_space<semaphore_mem>>)
      %c10_i32_136 = arith.constant 10 : i32
      %196 = arith.addi %115, %c10_i32_136 : i32
      %197 = arith.index_cast %196 : i32 to index
      %198 = memref.load %arg1[%197] : memref<16xi32, #tpu.memory_space<smem>>
      %c10_i32_137 = arith.constant 10 : i32
      %c0_i32_138 = arith.constant 0 : i32
      %199 = tpu.memref_slice %arg2[%198, %c0_i32_138] : memref<64x128xf32, #tpu.memory_space<any>> -> memref<1x128xf32, #tpu.memory_space<any>>
      %c10_i32_139 = arith.constant 10 : i32
      %c0_i32_140 = arith.constant 0 : i32
      %200 = tpu.memref_slice %arg4[%114, %c10_i32_139, %c0_i32_140] : memref<2x16x128xf32, #tpu.memory_space<vmem>> -> memref<1x1x128xf32, #tpu.memory_space<vmem>>
      %201 = tpu.memref_squeeze %200 : memref<1x1x128xf32, #tpu.memory_space<vmem>> -> memref<1x128xf32, #tpu.memory_space<vmem>>
      %202 = tpu.memref_slice %arg5[%114, %c10_i32_137] : memref<2x16x!tpu.dma_semaphore, #tpu.memory_space<semaphore_mem>> -> memref<1x1x!tpu.dma_semaphore, #tpu.memory_space<semaphore_mem>>
      %203 = tpu.memref_squeeze %202 : memref<1x1x!tpu.dma_semaphore, #tpu.memory_space<semaphore_mem>> -> memref<!tpu.dma_semaphore, #tpu.memory_space<semaphore_mem>>
      tpu.enqueue_dma source(%199 : memref<1x128xf32, #tpu.memory_space<any>>) target(%201 : memref<1x128xf32, #tpu.memory_space<vmem>>) target_semaphore(%203 : memref<!tpu.dma_semaphore, #tpu.memory_space<semaphore_mem>>)
      %c11_i32_141 = arith.constant 11 : i32
      %204 = arith.addi %115, %c11_i32_141 : i32
      %205 = arith.index_cast %204 : i32 to index
      %206 = memref.load %arg1[%205] : memref<16xi32, #tpu.memory_space<smem>>
      %c11_i32_142 = arith.constant 11 : i32
      %c0_i32_143 = arith.constant 0 : i32
      %207 = tpu.memref_slice %arg2[%206, %c0_i32_143] : memref<64x128xf32, #tpu.memory_space<any>> -> memref<1x128xf32, #tpu.memory_space<any>>
      %c11_i32_144 = arith.constant 11 : i32
      %c0_i32_145 = arith.constant 0 : i32
      %208 = tpu.memref_slice %arg4[%114, %c11_i32_144, %c0_i32_145] : memref<2x16x128xf32, #tpu.memory_space<vmem>> -> memref<1x1x128xf32, #tpu.memory_space<vmem>>
      %209 = tpu.memref_squeeze %208 : memref<1x1x128xf32, #tpu.memory_space<vmem>> -> memref<1x128xf32, #tpu.memory_space<vmem>>
      %210 = tpu.memref_slice %arg5[%114, %c11_i32_142] : memref<2x16x!tpu.dma_semaphore, #tpu.memory_space<semaphore_mem>> -> memref<1x1x!tpu.dma_semaphore, #tpu.memory_space<semaphore_mem>>
      %211 = tpu.memref_squeeze %210 : memref<1x1x!tpu.dma_semaphore, #tpu.memory_space<semaphore_mem>> -> memref<!tpu.dma_semaphore, #tpu.memory_space<semaphore_mem>>
      tpu.enqueue_dma source(%207 : memref<1x128xf32, #tpu.memory_space<any>>) target(%209 : memref<1x128xf32, #tpu.memory_space<vmem>>) target_semaphore(%211 : memref<!tpu.dma_semaphore, #tpu.memory_space<semaphore_mem>>)
      %c12_i32_146 = arith.constant 12 : i32
      %212 = arith.addi %115, %c12_i32_146 : i32
      %213 = arith.index_cast %212 : i32 to index
      %214 = memref.load %arg1[%213] : memref<16xi32, #tpu.memory_space<smem>>
      %c12_i32_147 = arith.constant 12 : i32
      %c0_i32_148 = arith.constant 0 : i32
      %215 = tpu.memref_slice %arg2[%214, %c0_i32_148] : memref<64x128xf32, #tpu.memory_space<any>> -> memref<1x128xf32, #tpu.memory_space<any>>
      %c12_i32_149 = arith.constant 12 : i32
      %c0_i32_150 = arith.constant 0 : i32
      %216 = tpu.memref_slice %arg4[%114, %c12_i32_149, %c0_i32_150] : memref<2x16x128xf32, #tpu.memory_space<vmem>> -> memref<1x1x128xf32, #tpu.memory_space<vmem>>
      %217 = tpu.memref_squeeze %216 : memref<1x1x128xf32, #tpu.memory_space<vmem>> -> memref<1x128xf32, #tpu.memory_space<vmem>>
      %218 = tpu.memref_slice %arg5[%114, %c12_i32_147] : memref<2x16x!tpu.dma_semaphore, #tpu.memory_space<semaphore_mem>> -> memref<1x1x!tpu.dma_semaphore, #tpu.memory_space<semaphore_mem>>
      %219 = tpu.memref_squeeze %218 : memref<1x1x!tpu.dma_semaphore, #tpu.memory_space<semaphore_mem>> -> memref<!tpu.dma_semaphore, #tpu.memory_space<semaphore_mem>>
      tpu.enqueue_dma source(%215 : memref<1x128xf32, #tpu.memory_space<any>>) target(%217 : memref<1x128xf32, #tpu.memory_space<vmem>>) target_semaphore(%219 : memref<!tpu.dma_semaphore, #tpu.memory_space<semaphore_mem>>)
      %c13_i32_151 = arith.constant 13 : i32
      %220 = arith.addi %115, %c13_i32_151 : i32
      %221 = arith.index_cast %220 : i32 to index
      %222 = memref.load %arg1[%221] : memref<16xi32, #tpu.memory_space<smem>>
      %c13_i32_152 = arith.constant 13 : i32
      %c0_i32_153 = arith.constant 0 : i32
      %223 = tpu.memref_slice %arg2[%222, %c0_i32_153] : memref<64x128xf32, #tpu.memory_space<any>> -> memref<1x128xf32, #tpu.memory_space<any>>
      %c13_i32_154 = arith.constant 13 : i32
      %c0_i32_155 = arith.constant 0 : i32
      %224 = tpu.memref_slice %arg4[%114, %c13_i32_154, %c0_i32_155] : memref<2x16x128xf32, #tpu.memory_space<vmem>> -> memref<1x1x128xf32, #tpu.memory_space<vmem>>
      %225 = tpu.memref_squeeze %224 : memref<1x1x128xf32, #tpu.memory_space<vmem>> -> memref<1x128xf32, #tpu.memory_space<vmem>>
      %226 = tpu.memref_slice %arg5[%114, %c13_i32_152] : memref<2x16x!tpu.dma_semaphore, #tpu.memory_space<semaphore_mem>> -> memref<1x1x!tpu.dma_semaphore, #tpu.memory_space<semaphore_mem>>
      %227 = tpu.memref_squeeze %226 : memref<1x1x!tpu.dma_semaphore, #tpu.memory_space<semaphore_mem>> -> memref<!tpu.dma_semaphore, #tpu.memory_space<semaphore_mem>>
      tpu.enqueue_dma source(%223 : memref<1x128xf32, #tpu.memory_space<any>>) target(%225 : memref<1x128xf32, #tpu.memory_space<vmem>>) target_semaphore(%227 : memref<!tpu.dma_semaphore, #tpu.memory_space<semaphore_mem>>)
      %c14_i32_156 = arith.constant 14 : i32
      %228 = arith.addi %115, %c14_i32_156 : i32
      %229 = arith.index_cast %228 : i32 to index
      %230 = memref.load %arg1[%229] : memref<16xi32, #tpu.memory_space<smem>>
      %c14_i32_157 = arith.constant 14 : i32
      %c0_i32_158 = arith.constant 0 : i32
      %231 = tpu.memref_slice %arg2[%230, %c0_i32_158] : memref<64x128xf32, #tpu.memory_space<any>> -> memref<1x128xf32, #tpu.memory_space<any>>
      %c14_i32_159 = arith.constant 14 : i32
      %c0_i32_160 = arith.constant 0 : i32
      %232 = tpu.memref_slice %arg4[%114, %c14_i32_159, %c0_i32_160] : memref<2x16x128xf32, #tpu.memory_space<vmem>> -> memref<1x1x128xf32, #tpu.memory_space<vmem>>
      %233 = tpu.memref_squeeze %232 : memref<1x1x128xf32, #tpu.memory_space<vmem>> -> memref<1x128xf32, #tpu.memory_space<vmem>>
      %234 = tpu.memref_slice %arg5[%114, %c14_i32_157] : memref<2x16x!tpu.dma_semaphore, #tpu.memory_space<semaphore_mem>> -> memref<1x1x!tpu.dma_semaphore, #tpu.memory_space<semaphore_mem>>
      %235 = tpu.memref_squeeze %234 : memref<1x1x!tpu.dma_semaphore, #tpu.memory_space<semaphore_mem>> -> memref<!tpu.dma_semaphore, #tpu.memory_space<semaphore_mem>>
      tpu.enqueue_dma source(%231 : memref<1x128xf32, #tpu.memory_space<any>>) target(%233 : memref<1x128xf32, #tpu.memory_space<vmem>>) target_semaphore(%235 : memref<!tpu.dma_semaphore, #tpu.memory_space<semaphore_mem>>)
      %c15_i32_161 = arith.constant 15 : i32
      %236 = arith.addi %115, %c15_i32_161 : i32
      %237 = arith.index_cast %236 : i32 to index
      %238 = memref.load %arg1[%237] : memref<16xi32, #tpu.memory_space<smem>>
      %c15_i32_162 = arith.constant 15 : i32
      %c0_i32_163 = arith.constant 0 : i32
      %239 = tpu.memref_slice %arg2[%238, %c0_i32_163] : memref<64x128xf32, #tpu.memory_space<any>> -> memref<1x128xf32, #tpu.memory_space<any>>
      %c15_i32_164 = arith.constant 15 : i32
      %c0_i32_165 = arith.constant 0 : i32
      %240 = tpu.memref_slice %arg4[%114, %c15_i32_164, %c0_i32_165] : memref<2x16x128xf32, #tpu.memory_space<vmem>> -> memref<1x1x128xf32, #tpu.memory_space<vmem>>
      %241 = tpu.memref_squeeze %240 : memref<1x1x128xf32, #tpu.memory_space<vmem>> -> memref<1x128xf32, #tpu.memory_space<vmem>>
      %242 = tpu.memref_slice %arg5[%114, %c15_i32_162] : memref<2x16x!tpu.dma_semaphore, #tpu.memory_space<semaphore_mem>> -> memref<1x1x!tpu.dma_semaphore, #tpu.memory_space<semaphore_mem>>
      %243 = tpu.memref_squeeze %242 : memref<1x1x!tpu.dma_semaphore, #tpu.memory_space<semaphore_mem>> -> memref<!tpu.dma_semaphore, #tpu.memory_space<semaphore_mem>>
      tpu.enqueue_dma source(%239 : memref<1x128xf32, #tpu.memory_space<any>>) target(%241 : memref<1x128xf32, #tpu.memory_space<vmem>>) target_semaphore(%243 : memref<!tpu.dma_semaphore, #tpu.memory_space<semaphore_mem>>)
    } else {
    }
    %c0_i32_8 = arith.constant 0 : i32
    %c0_i32_9 = arith.constant 0 : i32
    %c0_i32_10 = arith.constant 0 : i32
    %17 = tpu.memref_slice %arg2[%c0_i32_9, %c0_i32_10] : memref<64x128xf32, #tpu.memory_space<any>> -> memref<1x128xf32, #tpu.memory_space<any>>
    %c0_i32_11 = arith.constant 0 : i32
    %c0_i32_12 = arith.constant 0 : i32
    %18 = tpu.memref_slice %arg4[%9, %c0_i32_11, %c0_i32_12] : memref<2x16x128xf32, #tpu.memory_space<vmem>> -> memref<1x1x128xf32, #tpu.memory_space<vmem>>
    %19 = tpu.memref_squeeze %18 : memref<1x1x128xf32, #tpu.memory_space<vmem>> -> memref<1x128xf32, #tpu.memory_space<vmem>>
    %20 = tpu.memref_slice %arg5[%9, %c0_i32_8] : memref<2x16x!tpu.dma_semaphore, #tpu.memory_space<semaphore_mem>> -> memref<1x1x!tpu.dma_semaphore, #tpu.memory_space<semaphore_mem>>
    %21 = tpu.memref_squeeze %20 : memref<1x1x!tpu.dma_semaphore, #tpu.memory_space<semaphore_mem>> -> memref<!tpu.dma_semaphore, #tpu.memory_space<semaphore_mem>>
    tpu.wait_dma2 semaphore(%21 : memref<!tpu.dma_semaphore, #tpu.memory_space<semaphore_mem>>) src(%17 : memref<1x128xf32, #tpu.memory_space<any>>) dst(%19 : memref<1x128xf32, #tpu.memory_space<vmem>>)
    %c1_i32_13 = arith.constant 1 : i32
    %c0_i32_14 = arith.constant 0 : i32
    %c0_i32_15 = arith.constant 0 : i32
    %22 = tpu.memref_slice %arg2[%c0_i32_14, %c0_i32_15] : memref<64x128xf32, #tpu.memory_space<any>> -> memref<1x128xf32, #tpu.memory_space<any>>
    %c1_i32_16 = arith.constant 1 : i32
    %c0_i32_17 = arith.constant 0 : i32
    %23 = tpu.memref_slice %arg4[%9, %c1_i32_16, %c0_i32_17] : memref<2x16x128xf32, #tpu.memory_space<vmem>> -> memref<1x1x128xf32, #tpu.memory_space<vmem>>
    %24 = tpu.memref_squeeze %23 : memref<1x1x128xf32, #tpu.memory_space<vmem>> -> memref<1x128xf32, #tpu.memory_space<vmem>>
    %25 = tpu.memref_slice %arg5[%9, %c1_i32_13] : memref<2x16x!tpu.dma_semaphore, #tpu.memory_space<semaphore_mem>> -> memref<1x1x!tpu.dma_semaphore, #tpu.memory_space<semaphore_mem>>
    %26 = tpu.memref_squeeze %25 : memref<1x1x!tpu.dma_semaphore, #tpu.memory_space<semaphore_mem>> -> memref<!tpu.dma_semaphore, #tpu.memory_space<semaphore_mem>>
    tpu.wait_dma2 semaphore(%26 : memref<!tpu.dma_semaphore, #tpu.memory_space<semaphore_mem>>) src(%22 : memref<1x128xf32, #tpu.memory_space<any>>) dst(%24 : memref<1x128xf32, #tpu.memory_space<vmem>>)
    %c2_i32_18 = arith.constant 2 : i32
    %c0_i32_19 = arith.constant 0 : i32
    %c0_i32_20 = arith.constant 0 : i32
    %27 = tpu.memref_slice %arg2[%c0_i32_19, %c0_i32_20] : memref<64x128xf32, #tpu.memory_space<any>> -> memref<1x128xf32, #tpu.memory_space<any>>
    %c2_i32_21 = arith.constant 2 : i32
    %c0_i32_22 = arith.constant 0 : i32
    %28 = tpu.memref_slice %arg4[%9, %c2_i32_21, %c0_i32_22] : memref<2x16x128xf32, #tpu.memory_space<vmem>> -> memref<1x1x128xf32, #tpu.memory_space<vmem>>
    %29 = tpu.memref_squeeze %28 : memref<1x1x128xf32, #tpu.memory_space<vmem>> -> memref<1x128xf32, #tpu.memory_space<vmem>>
    %30 = tpu.memref_slice %arg5[%9, %c2_i32_18] : memref<2x16x!tpu.dma_semaphore, #tpu.memory_space<semaphore_mem>> -> memref<1x1x!tpu.dma_semaphore, #tpu.memory_space<semaphore_mem>>
    %31 = tpu.memref_squeeze %30 : memref<1x1x!tpu.dma_semaphore, #tpu.memory_space<semaphore_mem>> -> memref<!tpu.dma_semaphore, #tpu.memory_space<semaphore_mem>>
    tpu.wait_dma2 semaphore(%31 : memref<!tpu.dma_semaphore, #tpu.memory_space<semaphore_mem>>) src(%27 : memref<1x128xf32, #tpu.memory_space<any>>) dst(%29 : memref<1x128xf32, #tpu.memory_space<vmem>>)
    %c3_i32 = arith.constant 3 : i32
    %c0_i32_23 = arith.constant 0 : i32
    %c0_i32_24 = arith.constant 0 : i32
    %32 = tpu.memref_slice %arg2[%c0_i32_23, %c0_i32_24] : memref<64x128xf32, #tpu.memory_space<any>> -> memref<1x128xf32, #tpu.memory_space<any>>
    %c3_i32_25 = arith.constant 3 : i32
    %c0_i32_26 = arith.constant 0 : i32
    %33 = tpu.memref_slice %arg4[%9, %c3_i32_25, %c0_i32_26] : memref<2x16x128xf32, #tpu.memory_space<vmem>> -> memref<1x1x128xf32, #tpu.memory_space<vmem>>
    %34 = tpu.memref_squeeze %33 : memref<1x1x128xf32, #tpu.memory_space<vmem>> -> memref<1x128xf32, #tpu.memory_space<vmem>>
    %35 = tpu.memref_slice %arg5[%9, %c3_i32] : memref<2x16x!tpu.dma_semaphore, #tpu.memory_space<semaphore_mem>> -> memref<1x1x!tpu.dma_semaphore, #tpu.memory_space<semaphore_mem>>
    %36 = tpu.memref_squeeze %35 : memref<1x1x!tpu.dma_semaphore, #tpu.memory_space<semaphore_mem>> -> memref<!tpu.dma_semaphore, #tpu.memory_space<semaphore_mem>>
    tpu.wait_dma2 semaphore(%36 : memref<!tpu.dma_semaphore, #tpu.memory_space<semaphore_mem>>) src(%32 : memref<1x128xf32, #tpu.memory_space<any>>) dst(%34 : memref<1x128xf32, #tpu.memory_space<vmem>>)
    %c4_i32 = arith.constant 4 : i32
    %c0_i32_27 = arith.constant 0 : i32
    %c0_i32_28 = arith.constant 0 : i32
    %37 = tpu.memref_slice %arg2[%c0_i32_27, %c0_i32_28] : memref<64x128xf32, #tpu.memory_space<any>> -> memref<1x128xf32, #tpu.memory_space<any>>
    %c4_i32_29 = arith.constant 4 : i32
    %c0_i32_30 = arith.constant 0 : i32
    %38 = tpu.memref_slice %arg4[%9, %c4_i32_29, %c0_i32_30] : memref<2x16x128xf32, #tpu.memory_space<vmem>> -> memref<1x1x128xf32, #tpu.memory_space<vmem>>
    %39 = tpu.memref_squeeze %38 : memref<1x1x128xf32, #tpu.memory_space<vmem>> -> memref<1x128xf32, #tpu.memory_space<vmem>>
    %40 = tpu.memref_slice %arg5[%9, %c4_i32] : memref<2x16x!tpu.dma_semaphore, #tpu.memory_space<semaphore_mem>> -> memref<1x1x!tpu.dma_semaphore, #tpu.memory_space<semaphore_mem>>
    %41 = tpu.memref_squeeze %40 : memref<1x1x!tpu.dma_semaphore, #tpu.memory_space<semaphore_mem>> -> memref<!tpu.dma_semaphore, #tpu.memory_space<semaphore_mem>>
    tpu.wait_dma2 semaphore(%41 : memref<!tpu.dma_semaphore, #tpu.memory_space<semaphore_mem>>) src(%37 : memref<1x128xf32, #tpu.memory_space<any>>) dst(%39 : memref<1x128xf32, #tpu.memory_space<vmem>>)
    %c5_i32 = arith.constant 5 : i32
    %c0_i32_31 = arith.constant 0 : i32
    %c0_i32_32 = arith.constant 0 : i32
    %42 = tpu.memref_slice %arg2[%c0_i32_31, %c0_i32_32] : memref<64x128xf32, #tpu.memory_space<any>> -> memref<1x128xf32, #tpu.memory_space<any>>
    %c5_i32_33 = arith.constant 5 : i32
    %c0_i32_34 = arith.constant 0 : i32
    %43 = tpu.memref_slice %arg4[%9, %c5_i32_33, %c0_i32_34] : memref<2x16x128xf32, #tpu.memory_space<vmem>> -> memref<1x1x128xf32, #tpu.memory_space<vmem>>
    %44 = tpu.memref_squeeze %43 : memref<1x1x128xf32, #tpu.memory_space<vmem>> -> memref<1x128xf32, #tpu.memory_space<vmem>>
    %45 = tpu.memref_slice %arg5[%9, %c5_i32] : memref<2x16x!tpu.dma_semaphore, #tpu.memory_space<semaphore_mem>> -> memref<1x1x!tpu.dma_semaphore, #tpu.memory_space<semaphore_mem>>
    %46 = tpu.memref_squeeze %45 : memref<1x1x!tpu.dma_semaphore, #tpu.memory_space<semaphore_mem>> -> memref<!tpu.dma_semaphore, #tpu.memory_space<semaphore_mem>>
    tpu.wait_dma2 semaphore(%46 : memref<!tpu.dma_semaphore, #tpu.memory_space<semaphore_mem>>) src(%42 : memref<1x128xf32, #tpu.memory_space<any>>) dst(%44 : memref<1x128xf32, #tpu.memory_space<vmem>>)
    %c6_i32 = arith.constant 6 : i32
    %c0_i32_35 = arith.constant 0 : i32
    %c0_i32_36 = arith.constant 0 : i32
    %47 = tpu.memref_slice %arg2[%c0_i32_35, %c0_i32_36] : memref<64x128xf32, #tpu.memory_space<any>> -> memref<1x128xf32, #tpu.memory_space<any>>
    %c6_i32_37 = arith.constant 6 : i32
    %c0_i32_38 = arith.constant 0 : i32
    %48 = tpu.memref_slice %arg4[%9, %c6_i32_37, %c0_i32_38] : memref<2x16x128xf32, #tpu.memory_space<vmem>> -> memref<1x1x128xf32, #tpu.memory_space<vmem>>
    %49 = tpu.memref_squeeze %48 : memref<1x1x128xf32, #tpu.memory_space<vmem>> -> memref<1x128xf32, #tpu.memory_space<vmem>>
    %50 = tpu.memref_slice %arg5[%9, %c6_i32] : memref<2x16x!tpu.dma_semaphore, #tpu.memory_space<semaphore_mem>> -> memref<1x1x!tpu.dma_semaphore, #tpu.memory_space<semaphore_mem>>
    %51 = tpu.memref_squeeze %50 : memref<1x1x!tpu.dma_semaphore, #tpu.memory_space<semaphore_mem>> -> memref<!tpu.dma_semaphore, #tpu.memory_space<semaphore_mem>>
    tpu.wait_dma2 semaphore(%51 : memref<!tpu.dma_semaphore, #tpu.memory_space<semaphore_mem>>) src(%47 : memref<1x128xf32, #tpu.memory_space<any>>) dst(%49 : memref<1x128xf32, #tpu.memory_space<vmem>>)
    %c7_i32 = arith.constant 7 : i32
    %c0_i32_39 = arith.constant 0 : i32
    %c0_i32_40 = arith.constant 0 : i32
    %52 = tpu.memref_slice %arg2[%c0_i32_39, %c0_i32_40] : memref<64x128xf32, #tpu.memory_space<any>> -> memref<1x128xf32, #tpu.memory_space<any>>
    %c7_i32_41 = arith.constant 7 : i32
    %c0_i32_42 = arith.constant 0 : i32
    %53 = tpu.memref_slice %arg4[%9, %c7_i32_41, %c0_i32_42] : memref<2x16x128xf32, #tpu.memory_space<vmem>> -> memref<1x1x128xf32, #tpu.memory_space<vmem>>
    %54 = tpu.memref_squeeze %53 : memref<1x1x128xf32, #tpu.memory_space<vmem>> -> memref<1x128xf32, #tpu.memory_space<vmem>>
    %55 = tpu.memref_slice %arg5[%9, %c7_i32] : memref<2x16x!tpu.dma_semaphore, #tpu.memory_space<semaphore_mem>> -> memref<1x1x!tpu.dma_semaphore, #tpu.memory_space<semaphore_mem>>
    %56 = tpu.memref_squeeze %55 : memref<1x1x!tpu.dma_semaphore, #tpu.memory_space<semaphore_mem>> -> memref<!tpu.dma_semaphore, #tpu.memory_space<semaphore_mem>>
    tpu.wait_dma2 semaphore(%56 : memref<!tpu.dma_semaphore, #tpu.memory_space<semaphore_mem>>) src(%52 : memref<1x128xf32, #tpu.memory_space<any>>) dst(%54 : memref<1x128xf32, #tpu.memory_space<vmem>>)
    %c8_i32 = arith.constant 8 : i32
    %c0_i32_43 = arith.constant 0 : i32
    %c0_i32_44 = arith.constant 0 : i32
    %57 = tpu.memref_slice %arg2[%c0_i32_43, %c0_i32_44] : memref<64x128xf32, #tpu.memory_space<any>> -> memref<1x128xf32, #tpu.memory_space<any>>
    %c8_i32_45 = arith.constant 8 : i32
    %c0_i32_46 = arith.constant 0 : i32
    %58 = tpu.memref_slice %arg4[%9, %c8_i32_45, %c0_i32_46] : memref<2x16x128xf32, #tpu.memory_space<vmem>> -> memref<1x1x128xf32, #tpu.memory_space<vmem>>
    %59 = tpu.memref_squeeze %58 : memref<1x1x128xf32, #tpu.memory_space<vmem>> -> memref<1x128xf32, #tpu.memory_space<vmem>>
    %60 = tpu.memref_slice %arg5[%9, %c8_i32] : memref<2x16x!tpu.dma_semaphore, #tpu.memory_space<semaphore_mem>> -> memref<1x1x!tpu.dma_semaphore, #tpu.memory_space<semaphore_mem>>
    %61 = tpu.memref_squeeze %60 : memref<1x1x!tpu.dma_semaphore, #tpu.memory_space<semaphore_mem>> -> memref<!tpu.dma_semaphore, #tpu.memory_space<semaphore_mem>>
    tpu.wait_dma2 semaphore(%61 : memref<!tpu.dma_semaphore, #tpu.memory_space<semaphore_mem>>) src(%57 : memref<1x128xf32, #tpu.memory_space<any>>) dst(%59 : memref<1x128xf32, #tpu.memory_space<vmem>>)
    %c9_i32 = arith.constant 9 : i32
    %c0_i32_47 = arith.constant 0 : i32
    %c0_i32_48 = arith.constant 0 : i32
    %62 = tpu.memref_slice %arg2[%c0_i32_47, %c0_i32_48] : memref<64x128xf32, #tpu.memory_space<any>> -> memref<1x128xf32, #tpu.memory_space<any>>
    %c9_i32_49 = arith.constant 9 : i32
    %c0_i32_50 = arith.constant 0 : i32
    %63 = tpu.memref_slice %arg4[%9, %c9_i32_49, %c0_i32_50] : memref<2x16x128xf32, #tpu.memory_space<vmem>> -> memref<1x1x128xf32, #tpu.memory_space<vmem>>
    %64 = tpu.memref_squeeze %63 : memref<1x1x128xf32, #tpu.memory_space<vmem>> -> memref<1x128xf32, #tpu.memory_space<vmem>>
    %65 = tpu.memref_slice %arg5[%9, %c9_i32] : memref<2x16x!tpu.dma_semaphore, #tpu.memory_space<semaphore_mem>> -> memref<1x1x!tpu.dma_semaphore, #tpu.memory_space<semaphore_mem>>
    %66 = tpu.memref_squeeze %65 : memref<1x1x!tpu.dma_semaphore, #tpu.memory_space<semaphore_mem>> -> memref<!tpu.dma_semaphore, #tpu.memory_space<semaphore_mem>>
    tpu.wait_dma2 semaphore(%66 : memref<!tpu.dma_semaphore, #tpu.memory_space<semaphore_mem>>) src(%62 : memref<1x128xf32, #tpu.memory_space<any>>) dst(%64 : memref<1x128xf32, #tpu.memory_space<vmem>>)
    %c10_i32 = arith.constant 10 : i32
    %c0_i32_51 = arith.constant 0 : i32
    %c0_i32_52 = arith.constant 0 : i32
    %67 = tpu.memref_slice %arg2[%c0_i32_51, %c0_i32_52] : memref<64x128xf32, #tpu.memory_space<any>> -> memref<1x128xf32, #tpu.memory_space<any>>
    %c10_i32_53 = arith.constant 10 : i32
    %c0_i32_54 = arith.constant 0 : i32
    %68 = tpu.memref_slice %arg4[%9, %c10_i32_53, %c0_i32_54] : memref<2x16x128xf32, #tpu.memory_space<vmem>> -> memref<1x1x128xf32, #tpu.memory_space<vmem>>
    %69 = tpu.memref_squeeze %68 : memref<1x1x128xf32, #tpu.memory_space<vmem>> -> memref<1x128xf32, #tpu.memory_space<vmem>>
    %70 = tpu.memref_slice %arg5[%9, %c10_i32] : memref<2x16x!tpu.dma_semaphore, #tpu.memory_space<semaphore_mem>> -> memref<1x1x!tpu.dma_semaphore, #tpu.memory_space<semaphore_mem>>
    %71 = tpu.memref_squeeze %70 : memref<1x1x!tpu.dma_semaphore, #tpu.memory_space<semaphore_mem>> -> memref<!tpu.dma_semaphore, #tpu.memory_space<semaphore_mem>>
    tpu.wait_dma2 semaphore(%71 : memref<!tpu.dma_semaphore, #tpu.memory_space<semaphore_mem>>) src(%67 : memref<1x128xf32, #tpu.memory_space<any>>) dst(%69 : memref<1x128xf32, #tpu.memory_space<vmem>>)
    %c11_i32 = arith.constant 11 : i32
    %c0_i32_55 = arith.constant 0 : i32
    %c0_i32_56 = arith.constant 0 : i32
    %72 = tpu.memref_slice %arg2[%c0_i32_55, %c0_i32_56] : memref<64x128xf32, #tpu.memory_space<any>> -> memref<1x128xf32, #tpu.memory_space<any>>
    %c11_i32_57 = arith.constant 11 : i32
    %c0_i32_58 = arith.constant 0 : i32
    %73 = tpu.memref_slice %arg4[%9, %c11_i32_57, %c0_i32_58] : memref<2x16x128xf32, #tpu.memory_space<vmem>> -> memref<1x1x128xf32, #tpu.memory_space<vmem>>
    %74 = tpu.memref_squeeze %73 : memref<1x1x128xf32, #tpu.memory_space<vmem>> -> memref<1x128xf32, #tpu.memory_space<vmem>>
    %75 = tpu.memref_slice %arg5[%9, %c11_i32] : memref<2x16x!tpu.dma_semaphore, #tpu.memory_space<semaphore_mem>> -> memref<1x1x!tpu.dma_semaphore, #tpu.memory_space<semaphore_mem>>
    %76 = tpu.memref_squeeze %75 : memref<1x1x!tpu.dma_semaphore, #tpu.memory_space<semaphore_mem>> -> memref<!tpu.dma_semaphore, #tpu.memory_space<semaphore_mem>>
    tpu.wait_dma2 semaphore(%76 : memref<!tpu.dma_semaphore, #tpu.memory_space<semaphore_mem>>) src(%72 : memref<1x128xf32, #tpu.memory_space<any>>) dst(%74 : memref<1x128xf32, #tpu.memory_space<vmem>>)
    %c12_i32 = arith.constant 12 : i32
    %c0_i32_59 = arith.constant 0 : i32
    %c0_i32_60 = arith.constant 0 : i32
    %77 = tpu.memref_slice %arg2[%c0_i32_59, %c0_i32_60] : memref<64x128xf32, #tpu.memory_space<any>> -> memref<1x128xf32, #tpu.memory_space<any>>
    %c12_i32_61 = arith.constant 12 : i32
    %c0_i32_62 = arith.constant 0 : i32
    %78 = tpu.memref_slice %arg4[%9, %c12_i32_61, %c0_i32_62] : memref<2x16x128xf32, #tpu.memory_space<vmem>> -> memref<1x1x128xf32, #tpu.memory_space<vmem>>
    %79 = tpu.memref_squeeze %78 : memref<1x1x128xf32, #tpu.memory_space<vmem>> -> memref<1x128xf32, #tpu.memory_space<vmem>>
    %80 = tpu.memref_slice %arg5[%9, %c12_i32] : memref<2x16x!tpu.dma_semaphore, #tpu.memory_space<semaphore_mem>> -> memref<1x1x!tpu.dma_semaphore, #tpu.memory_space<semaphore_mem>>
    %81 = tpu.memref_squeeze %80 : memref<1x1x!tpu.dma_semaphore, #tpu.memory_space<semaphore_mem>> -> memref<!tpu.dma_semaphore, #tpu.memory_space<semaphore_mem>>
    tpu.wait_dma2 semaphore(%81 : memref<!tpu.dma_semaphore, #tpu.memory_space<semaphore_mem>>) src(%77 : memref<1x128xf32, #tpu.memory_space<any>>) dst(%79 : memref<1x128xf32, #tpu.memory_space<vmem>>)
    %c13_i32 = arith.constant 13 : i32
    %c0_i32_63 = arith.constant 0 : i32
    %c0_i32_64 = arith.constant 0 : i32
    %82 = tpu.memref_slice %arg2[%c0_i32_63, %c0_i32_64] : memref<64x128xf32, #tpu.memory_space<any>> -> memref<1x128xf32, #tpu.memory_space<any>>
    %c13_i32_65 = arith.constant 13 : i32
    %c0_i32_66 = arith.constant 0 : i32
    %83 = tpu.memref_slice %arg4[%9, %c13_i32_65, %c0_i32_66] : memref<2x16x128xf32, #tpu.memory_space<vmem>> -> memref<1x1x128xf32, #tpu.memory_space<vmem>>
    %84 = tpu.memref_squeeze %83 : memref<1x1x128xf32, #tpu.memory_space<vmem>> -> memref<1x128xf32, #tpu.memory_space<vmem>>
    %85 = tpu.memref_slice %arg5[%9, %c13_i32] : memref<2x16x!tpu.dma_semaphore, #tpu.memory_space<semaphore_mem>> -> memref<1x1x!tpu.dma_semaphore, #tpu.memory_space<semaphore_mem>>
    %86 = tpu.memref_squeeze %85 : memref<1x1x!tpu.dma_semaphore, #tpu.memory_space<semaphore_mem>> -> memref<!tpu.dma_semaphore, #tpu.memory_space<semaphore_mem>>
    tpu.wait_dma2 semaphore(%86 : memref<!tpu.dma_semaphore, #tpu.memory_space<semaphore_mem>>) src(%82 : memref<1x128xf32, #tpu.memory_space<any>>) dst(%84 : memref<1x128xf32, #tpu.memory_space<vmem>>)
    %c14_i32 = arith.constant 14 : i32
    %c0_i32_67 = arith.constant 0 : i32
    %c0_i32_68 = arith.constant 0 : i32
    %87 = tpu.memref_slice %arg2[%c0_i32_67, %c0_i32_68] : memref<64x128xf32, #tpu.memory_space<any>> -> memref<1x128xf32, #tpu.memory_space<any>>
    %c14_i32_69 = arith.constant 14 : i32
    %c0_i32_70 = arith.constant 0 : i32
    %88 = tpu.memref_slice %arg4[%9, %c14_i32_69, %c0_i32_70] : memref<2x16x128xf32, #tpu.memory_space<vmem>> -> memref<1x1x128xf32, #tpu.memory_space<vmem>>
    %89 = tpu.memref_squeeze %88 : memref<1x1x128xf32, #tpu.memory_space<vmem>> -> memref<1x128xf32, #tpu.memory_space<vmem>>
    %90 = tpu.memref_slice %arg5[%9, %c14_i32] : memref<2x16x!tpu.dma_semaphore, #tpu.memory_space<semaphore_mem>> -> memref<1x1x!tpu.dma_semaphore, #tpu.memory_space<semaphore_mem>>
    %91 = tpu.memref_squeeze %90 : memref<1x1x!tpu.dma_semaphore, #tpu.memory_space<semaphore_mem>> -> memref<!tpu.dma_semaphore, #tpu.memory_space<semaphore_mem>>
    tpu.wait_dma2 semaphore(%91 : memref<!tpu.dma_semaphore, #tpu.memory_space<semaphore_mem>>) src(%87 : memref<1x128xf32, #tpu.memory_space<any>>) dst(%89 : memref<1x128xf32, #tpu.memory_space<vmem>>)
    %c15_i32 = arith.constant 15 : i32
    %c0_i32_71 = arith.constant 0 : i32
    %c0_i32_72 = arith.constant 0 : i32
    %92 = tpu.memref_slice %arg2[%c0_i32_71, %c0_i32_72] : memref<64x128xf32, #tpu.memory_space<any>> -> memref<1x128xf32, #tpu.memory_space<any>>
    %c15_i32_73 = arith.constant 15 : i32
    %c0_i32_74 = arith.constant 0 : i32
    %93 = tpu.memref_slice %arg4[%9, %c15_i32_73, %c0_i32_74] : memref<2x16x128xf32, #tpu.memory_space<vmem>> -> memref<1x1x128xf32, #tpu.memory_space<vmem>>
    %94 = tpu.memref_squeeze %93 : memref<1x1x128xf32, #tpu.memory_space<vmem>> -> memref<1x128xf32, #tpu.memory_space<vmem>>
    %95 = tpu.memref_slice %arg5[%9, %c15_i32] : memref<2x16x!tpu.dma_semaphore, #tpu.memory_space<semaphore_mem>> -> memref<1x1x!tpu.dma_semaphore, #tpu.memory_space<semaphore_mem>>
    %96 = tpu.memref_squeeze %95 : memref<1x1x!tpu.dma_semaphore, #tpu.memory_space<semaphore_mem>> -> memref<!tpu.dma_semaphore, #tpu.memory_space<semaphore_mem>>
    tpu.wait_dma2 semaphore(%96 : memref<!tpu.dma_semaphore, #tpu.memory_space<semaphore_mem>>) src(%92 : memref<1x128xf32, #tpu.memory_space<any>>) dst(%94 : memref<1x128xf32, #tpu.memory_space<vmem>>)
    %97 = arith.index_cast %9 : i32 to index
    %c0 = arith.constant 0 : index
    %c0_75 = arith.constant 0 : index
    %98 = vector.load %arg4[%97, %c0, %c0_75] : memref<2x16x128xf32, #tpu.memory_space<vmem>>, vector<1x16x128xf32>
    %99 = vector.shape_cast %98 : vector<1x16x128xf32> to vector<16x128xf32>
    %cst = arith.constant 11.3137083 : f32
    %100 = vector.broadcast %cst : f32 to vector<16x128xf32>
    %101 = arith.mulf %99, %100 : vector<16x128xf32>
    %c0_76 = arith.constant 0 : index
    %c0_77 = arith.constant 0 : index
    %102 = vector.load %arg3[%c0_76, %c0_77] : memref<16x128xf32, #tpu.memory_space<vmem>>, vector<16x128xf32>
    tpu.vector_store %arg3[%c0_76, %c0_77], %101 {strides = array<i32>} : memref<16x128xf32, #tpu.memory_space<vmem>>, vector<16x128xf32>,
    return
  }
  func.func @transform_1(%arg0: i32, %arg1: memref<16xi32, #tpu.memory_space<smem>>) -> (i32, i32) {
    %c0_i32 = arith.constant 0 : i32
    %c0_i32_0 = arith.constant 0 : i32
    return %arg0, %c0_i32 : i32, i32
  }
}

</mosaic_0001>

<bundles_post_ra>
// kernel: tpu_custom_call.1
= control target key start
LH: loop header
LB: loop body
LE: loop exit
PB: predicated region body
PF: predicated region fallthrough
CT: control target
= control target key end

     0   :  { %s1646_s12 = smov [#allocation5]   ;;  %s1858_s0 = inlined_call_operand.hbm [shape: s32[16], index: 0, kind: input, shape index: {}]   ;;  %s1859_s1 = inlined_call_operand.hbm [shape: f32[64,128], index: 1, kind: input, shape index: {}]   ;;  %s1860_s2 = inlined_call_operand.hbm [shape: f32[16,128], index: 2, kind: output, shape index: {}]  }
   0x1   :  { %s8_s11 = sshll.u32 %s1858_s0, 4  ;;  %s9_s11 = int_to_ptr.hbm [resolvable:$true] %s8_s11 }
   0x2   :  { %11 = dma.hbm_to_smem %s9_s11, 16, %s1646_s12, [#allocation4] }
   0x3   :  { %1610 = dma.done.wait [#allocation4], 16 }
   0x4   :  { %1611 = vsyncadd [#allocation4], 4294967280 }
   0x5   :  { %14 = sfence }
   0x6   :  { %15 = vsyncpa [#allocation7], 0  ;;  %s28_s13 = sld [smem:[#allocation5]]  ;;  %s1647_s14 = smov [#allocation2]  }
   0x7   :  { %s39_s15 = sshll.u32 %s1647_s14, 4  ;;  %s1107_s16 = sld [smem:[#allocation5 + $0x1]]  ;;  %s40_s15 = int_to_ptr.vmem [resolvable:$true] %s39_s15 }
   0x8   :  { %s1648_s17 = smov [#allocation2 + $0x1]   ;;  %s1686_s19 = sld [smem:[#allocation5 + $0x2]] }
   0x9   :  { %s1684_s18 = sshll.u32 %s1648_s17, 4  ;;  %s1649_s0 = smov [#allocation2 + $0x2]   ;;  %s57_s18 = int_to_ptr.vmem [resolvable:$true] %s1684_s18 }
   0xa   :  { %s1689_s20 = sshll.u32 %s1649_s0, 4  ;;  %s1691_s21 = sld [smem:[#allocation5 + $0x3]]  ;;  %s74_s20 = int_to_ptr.vmem [resolvable:$true] %s1689_s20 }
   0xb   :  { %s1703_s6 = scalar_lea.hbm %s1859_s1, 64 }
   0xc   :  { %s29_s24 = scalar_lea.hbm %s1859_s1, %s28_s13 }
   0xd   :  { %s37_s25 = sshll.u32 %s29_s24, 4  ;;  %s44_s28 = scalar_lea.hbm %s1859_s1, %s1107_s16  ;;  %s38_s25 = int_to_ptr.hbm [resolvable:$true] %s37_s25 }
   0xe   :  { %s54_s29 = sshll.u32 %s44_s28, 4  ;;  %s1202_s30 = sshra.s32 %s38_s25, 4  ;;  %s1203_s30 = int_to_ptr.hbm [resolvable:$true] %s1202_s30  ;;  %s55_s29 = int_to_ptr.hbm [resolvable:$true] %s54_s29 }
   0xf   :  { %s1204_s3 = scalar_lea.hbm %s1203_s30, 1  ;;  %p1207_p1 = scmp.lt.s32.totalorder %s1203_s30, %s1859_s1 }
  0x10   :  { %p1205_p0 = scmp.ne.s32.totalorder %s1203_s30, %s1204_s3  ;;  %p1208_p2 = scmp.lt.s32.totalorder %s1703_s6, %s1204_s3 }
  0x12   :  { %p1209_p3 = por %p1208_p2, %p1207_p1 }
  0x14   :  { %p1210_p4 = pnand %p1209_p3, %p1205_p0 }
  0x16   :  { %1213 = shalt.err (!%p1210_p4)  }
  0x17   :  { %42 = dma.hbm_to_vmem [thread:$0]  %s38_s25, 16, %s40_s15, [#allocation3] }
  0x18   :  { %s61_s11 = scalar_lea.hbm %s1859_s1, %s1686_s19  ;;  %s1226_s12 = sshra.s32 %s55_s29, 4  ;;  %s1227_s12 = int_to_ptr.hbm [resolvable:$true] %s1226_s12 }
  0x19   :  { %s1228_s13 = scalar_lea.hbm %s1227_s12, 1  ;;  %p1231_p6 = scmp.lt.s32.totalorder %s1227_s12, %s1859_s1 }
  0x1a   :  { %p1229_p5 = scmp.ne.s32.totalorder %s1227_s12, %s1228_s13  ;;  %p1232_p7 = scmp.lt.s32.totalorder %s1703_s6, %s1228_s13 }
  0x1c   :  { %p1233_p8 = por %p1232_p7, %p1231_p6 }
  0x1e   :  { %p1234_p9 = pnand %p1233_p8, %p1229_p5 }
  0x20   :  { %1237 = shalt.err (!%p1234_p9)  }
  0x21   :  { %59 = dma.hbm_to_vmem [thread:$0]  %s55_s29, 16, %s57_s18, [#allocation3 + $0x1] }
  0x22   :  { %s71_s15 = sshll.u32 %s61_s11, 4  ;;  %s78_s0 = scalar_lea.hbm %s1859_s1, %s1691_s21  ;;  %s72_s15 = int_to_ptr.hbm [resolvable:$true] %s71_s15 }
  0x23   :  { %s88_s22 = sshll.u32 %s78_s0, 4  ;;  %s1250_s23 = sshra.s32 %s72_s15, 4  ;;  %s1251_s23 = int_to_ptr.hbm [resolvable:$true] %s1250_s23  ;;  %s89_s22 = int_to_ptr.hbm [resolvable:$true] %s88_s22 }
  0x24   :  { %s1252_s24 = scalar_lea.hbm %s1251_s23, 1  ;;  %p1255_p11 = scmp.lt.s32.totalorder %s1251_s23, %s1859_s1 }
  0x25   :  { %p1253_p10 = scmp.ne.s32.totalorder %s1251_s23, %s1252_s24  ;;  %p1256_p12 = scmp.lt.s32.totalorder %s1703_s6, %s1252_s24 }
  0x27   :  { %p1257_p13 = por %p1256_p12, %p1255_p11 }
  0x29   :  { %p1258_p0 = pnand %p1257_p13, %p1253_p10 }
  0x2b   :  { %1261 = shalt.err (!%p1258_p0)  }
  0x2c   :  { %76 = dma.hbm_to_vmem [thread:$0]  %s72_s15, 16, %s74_s20, [#allocation3 + $0x2] }
  0x2d   :  { %s1650_s18 = smov [#allocation2 + $0x3]   ;;  %s1110_s27 = sld [smem:[#allocation5 + $0x4]] }
  0x2e   :  { %s90_s21 = sshll.u32 %s1650_s18, 4  ;;  %s1274_s28 = sshra.s32 %s89_s22, 4  ;;  %s91_s21 = int_to_ptr.vmem [resolvable:$true] %s90_s21  ;;  %s1275_s28 = int_to_ptr.hbm [resolvable:$true] %s1274_s28 }
  0x2f   :  { %s1276_s29 = scalar_lea.hbm %s1275_s28, 1  ;;  %p1279_p2 = scmp.lt.s32.totalorder %s1275_s28, %s1859_s1 }
  0x30   :  { %p1277_p1 = scmp.ne.s32.totalorder %s1275_s28, %s1276_s29  ;;  %p1280_p3 = scmp.lt.s32.totalorder %s1703_s6, %s1276_s29 }
  0x32   :  { %p1281_p4 = por %p1280_p3, %p1279_p2 }
  0x34   :  { %p1282_p5 = pnand %p1281_p4, %p1277_p1 }
  0x36   :  { %1285 = shalt.err (!%p1282_p5)  }
  0x37   :  { %93 = dma.hbm_to_vmem [thread:$0]  %s89_s22, 16, %s91_s21, [#allocation3 + $0x3] }
  0x38   :  { %s1651_s4 = smov [#allocation2 + $0x4]   ;;  %s1111_s5 = sld [smem:[#allocation5 + $0x5]] }
  0x39   :  { %s107_s20 = sshll.u32 %s1651_s4, 4  ;;  %s1652_s7 = smov [#allocation2 + $0x5]   ;;  %s108_s20 = int_to_ptr.vmem [resolvable:$true] %s107_s20 }
  0x3a   :  { %s1733_s8 = sshll.u32 %s1652_s7, 4  ;;  %s1112_s9 = sld [smem:[#allocation5 + $0x6]]  ;;  %s125_s8 = int_to_ptr.vmem [resolvable:$true] %s1733_s8 }
  0x3b   :  { %s95_s12 = scalar_lea.hbm %s1859_s1, %s1110_s27  ;;  %s1653_s14 = smov [#allocation2 + $0x6]  }
  0x3c   :  { %s105_s13 = sshll.u32 %s95_s12, 4  ;;  %s1739_s16 = sshll.u32 %s1653_s14, 4  ;;  %s106_s13 = int_to_ptr.hbm [resolvable:$true] %s105_s13  ;;  %s142_s16 = int_to_ptr.vmem [resolvable:$true] %s1739_s16 }
  0x3d   :  { %s1298_s15 = sshra.s32 %s106_s13, 4  ;;  %s1299_s15 = int_to_ptr.hbm [resolvable:$true] %s1298_s15 }
  0x3e   :  { %s1300_s17 = scalar_lea.hbm %s1299_s15, 1  ;;  %p1303_p7 = scmp.lt.s32.totalorder %s1299_s15, %s1859_s1 }
  0x3f   :  { %p1301_p6 = scmp.ne.s32.totalorder %s1299_s15, %s1300_s17  ;;  %p1304_p8 = scmp.lt.s32.totalorder %s1703_s6, %s1300_s17 }
  0x41   :  { %p1305_p9 = por %p1304_p8, %p1303_p7 }
  0x43   :  { %p1306_p10 = pnand %p1305_p9, %p1301_p6 }
  0x45   :  { %1309 = shalt.err (!%p1306_p10)  }
  0x46   :  { %110 = dma.hbm_to_vmem [thread:$0]  %s106_s13, 16, %s108_s20, [#allocation3 + $0x4] }
  0x47   :  { %s112_s24 = scalar_lea.hbm %s1859_s1, %s1111_s5  ;;  %s129_s21 = scalar_lea.hbm %s1859_s1, %s1112_s9 }
  0x48   :  { %s122_s25 = sshll.u32 %s112_s24, 4  ;;  %s139_s27 = sshll.u32 %s129_s21, 4  ;;  %s123_s25 = int_to_ptr.hbm [resolvable:$true] %s122_s25  ;;  %s140_s27 = int_to_ptr.hbm [resolvable:$true] %s139_s27 }
  0x49   :  { %s1322_s28 = sshra.s32 %s123_s25, 4  ;;  %s1323_s28 = int_to_ptr.hbm [resolvable:$true] %s1322_s28 }
  0x4a   :  { %s1324_s29 = scalar_lea.hbm %s1323_s28, 1  ;;  %p1327_p12 = scmp.lt.s32.totalorder %s1323_s28, %s1859_s1 }
  0x4b   :  { %p1325_p11 = scmp.ne.s32.totalorder %s1323_s28, %s1324_s29  ;;  %p1328_p13 = scmp.lt.s32.totalorder %s1703_s6, %s1324_s29 }
  0x4d   :  { %p1329_p0 = por %p1328_p13, %p1327_p12 }
  0x4f   :  { %p1330_p1 = pnand %p1329_p0, %p1325_p11 }
  0x51   :  { %1333 = shalt.err (!%p1330_p1)  }
  0x52   :  { %127 = dma.hbm_to_vmem [thread:$0]  %s123_s25, 16, %s125_s8, [#allocation3 + $0x5] }
  0x53   :  { %s1113_s4 = sld [smem:[#allocation5 + $0x7]]  ;;  %s1346_s20 = sshra.s32 %s140_s27, 4  ;;  %s1347_s20 = int_to_ptr.hbm [resolvable:$true] %s1346_s20 }
  0x54   :  { %s1348_s5 = scalar_lea.hbm %s1347_s20, 1  ;;  %p1351_p3 = scmp.lt.s32.totalorder %s1347_s20, %s1859_s1 }
  0x55   :  { %p1349_p2 = scmp.ne.s32.totalorder %s1347_s20, %s1348_s5  ;;  %p1352_p4 = scmp.lt.s32.totalorder %s1703_s6, %s1348_s5 }
  0x57   :  { %p1353_p5 = por %p1352_p4, %p1351_p3 }
  0x59   :  { %p1354_p6 = pnand %p1353_p5, %p1349_p2 }
  0x5b   :  { %1357 = shalt.err (!%p1354_p6)  }
  0x5c   :  { %144 = dma.hbm_to_vmem [thread:$0]  %s140_s27, 16, %s142_s16, [#allocation3 + $0x6] }
  0x5d   :  { %s1114_s10 = sld [smem:[#allocation5 + $0x8]]  ;;  %s1654_s11 = smov [#allocation2 + $0x7]  }
  0x5e   :  { %s158_s12 = sshll.u32 %s1654_s11, 4  ;;  %s1655_s8 = smov [#allocation2 + $0x8]   ;;  %s159_s12 = int_to_ptr.vmem [resolvable:$true] %s158_s12 }
  0x5f   :  { %s1762_s13 = sshll.u32 %s1655_s8, 4  ;;  %s1765_s14 = sld [smem:[#allocation5 + $0x9]]  ;;  %s176_s13 = int_to_ptr.vmem [resolvable:$true] %s1762_s13 }
  0x60   :  { %s146_s19 = scalar_lea.hbm %s1859_s1, %s1113_s4  ;;  %s1656_s22 = smov [#allocation2 + $0x9]  }
  0x61   :  { %s156_s0 = sshll.u32 %s146_s19, 4  ;;  %s1770_s23 = sshll.u32 %s1656_s22, 4  ;;  %s157_s0 = int_to_ptr.hbm [resolvable:$true] %s156_s0  ;;  %s193_s23 = int_to_ptr.vmem [resolvable:$true] %s1770_s23 }
  0x62   :  { %s1370_s26 = sshra.s32 %s157_s0, 4  ;;  %s1371_s26 = int_to_ptr.hbm [resolvable:$true] %s1370_s26 }
  0x63   :  { %s163_s25 = scalar_lea.hbm %s1859_s1, %s1114_s10  ;;  %s1372_s18 = scalar_lea.hbm %s1371_s26, 1 }
  0x64   :  { %p1373_p7 = scmp.ne.s32.totalorder %s1371_s26, %s1372_s18  ;;  %p1375_p8 = scmp.lt.s32.totalorder %s1371_s26, %s1859_s1 }
  0x65   :  { %p1376_p9 = scmp.lt.s32.totalorder %s1703_s6, %s1372_s18 }
  0x67   :  { %p1377_p10 = por %p1376_p9, %p1375_p8 }
  0x69   :  { %p1378_p11 = pnand %p1377_p10, %p1373_p7 }
  0x6b   :  { %1381 = shalt.err (!%p1378_p11)  }
  0x6c   :  { %161 = dma.hbm_to_vmem [thread:$0]  %s157_s0, 16, %s159_s12, [#allocation3 + $0x7] }
  0x6d   :  { %s173_s28 = sshll.u32 %s163_s25, 4  ;;  %s180_s3 = scalar_lea.hbm %s1859_s1, %s1765_s14  ;;  %s174_s28 = int_to_ptr.hbm [resolvable:$true] %s173_s28 }
  0x6e   :  { %s1394_s4 = sshra.s32 %s174_s28, 4  ;;  %s1395_s4 = int_to_ptr.hbm [resolvable:$true] %s1394_s4 }
  0x6f   :  { %s1396_s20 = scalar_lea.hbm %s1395_s4, 1  ;;  %p1399_p13 = scmp.lt.s32.totalorder %s1395_s4, %s1859_s1 }
  0x70   :  { %p1397_p12 = scmp.ne.s32.totalorder %s1395_s4, %s1396_s20  ;;  %p1400_p0 = scmp.lt.s32.totalorder %s1703_s6, %s1396_s20 }
  0x72   :  { %p1401_p1 = por %p1400_p0, %p1399_p13 }
  0x74   :  { %p1402_p2 = pnand %p1401_p1, %p1397_p12 }
  0x76   :  { %1405 = shalt.err (!%p1402_p2)  }
  0x77   :  { %178 = dma.hbm_to_vmem [thread:$0]  %s174_s28, 16, %s176_s13, [#allocation3 + $0x8] }
  0x78   :  { %s190_s9 = sshll.u32 %s180_s3, 4  ;;  %s1116_s10 = sld [smem:[#allocation5 + $0xa]]  ;;  %s191_s9 = int_to_ptr.hbm [resolvable:$true] %s190_s9 }
  0x79   :  { %s1418_s11 = sshra.s32 %s191_s9, 4  ;;  %s1419_s11 = int_to_ptr.hbm [resolvable:$true] %s1418_s11 }
  0x7a   :  { %s1420_s12 = scalar_lea.hbm %s1419_s11, 1  ;;  %p1423_p4 = scmp.lt.s32.totalorder %s1419_s11, %s1859_s1 }
  0x7b   :  { %p1421_p3 = scmp.ne.s32.totalorder %s1419_s11, %s1420_s12  ;;  %p1424_p5 = scmp.lt.s32.totalorder %s1703_s6, %s1420_s12 }
  0x7d   :  { %p1425_p6 = por %p1424_p5, %p1423_p4 }
  0x7f   :  { %p1426_p7 = pnand %p1425_p6, %p1421_p3 }
  0x81   :  { %1429 = shalt.err (!%p1426_p7)  }
  0x82   :  { %195 = dma.hbm_to_vmem [thread:$0]  %s191_s9, 16, %s193_s23, [#allocation3 + $0x9] }
  0x83   :  { %s1657_s15 = smov [#allocation2 + $0xa]   ;;  %s1117_s19 = sld [smem:[#allocation5 + $0xb]] }
  0x84   :  { %s209_s17 = sshll.u32 %s1657_s15, 4  ;;  %s1658_s13 = smov [#allocation2 + $0xb]   ;;  %s210_s17 = int_to_ptr.vmem [resolvable:$true] %s209_s17 }
  0x85   :  { %s1794_s0 = sshll.u32 %s1658_s13, 4  ;;  %s1118_s22 = sld [smem:[#allocation5 + $0xc]]  ;;  %s227_s0 = int_to_ptr.vmem [resolvable:$true] %s1794_s0 }
  0x86   :  { %s197_s25 = scalar_lea.hbm %s1859_s1, %s1116_s10  ;;  %s1659_s18 = smov [#allocation2 + $0xc]  }
  0x87   :  { %s207_s26 = sshll.u32 %s197_s25, 4  ;;  %s1800_s21 = sshll.u32 %s1659_s18, 4  ;;  %s208_s26 = int_to_ptr.hbm [resolvable:$true] %s207_s26  ;;  %s244_s21 = int_to_ptr.vmem [resolvable:$true] %s1800_s21 }
  0x88   :  { %s1442_s23 = sshra.s32 %s208_s26, 4  ;;  %s1443_s23 = int_to_ptr.hbm [resolvable:$true] %s1442_s23 }
  0x89   :  { %s1444_s27 = scalar_lea.hbm %s1443_s23, 1  ;;  %p1447_p9 = scmp.lt.s32.totalorder %s1443_s23, %s1859_s1 }
  0x8a   :  { %p1445_p8 = scmp.ne.s32.totalorder %s1443_s23, %s1444_s27  ;;  %p1448_p10 = scmp.lt.s32.totalorder %s1703_s6, %s1444_s27 }
  0x8c   :  { %p1449_p11 = por %p1448_p10, %p1447_p9 }
  0x8e   :  { %p1450_p12 = pnand %p1449_p11, %p1445_p8 }
  0x90   :  { %1453 = shalt.err (!%p1450_p12)  }
  0x91   :  { %212 = dma.hbm_to_vmem [thread:$0]  %s208_s26, 16, %s210_s17, [#allocation3 + $0xa] }
  0x92   :  { %s214_s4 = scalar_lea.hbm %s1859_s1, %s1117_s19  ;;  %s231_s9 = scalar_lea.hbm %s1859_s1, %s1118_s22 }
  0x93   :  { %s224_s20 = sshll.u32 %s214_s4, 4  ;;  %s241_s10 = sshll.u32 %s231_s9, 4  ;;  %s225_s20 = int_to_ptr.hbm [resolvable:$true] %s224_s20  ;;  %s242_s10 = int_to_ptr.hbm [resolvable:$true] %s241_s10 }
  0x94   :  { %s1466_s11 = sshra.s32 %s225_s20, 4  ;;  %s1467_s11 = int_to_ptr.hbm [resolvable:$true] %s1466_s11 }
  0x95   :  { %s1468_s12 = scalar_lea.hbm %s1467_s11, 1  ;;  %p1471_p0 = scmp.lt.s32.totalorder %s1467_s11, %s1859_s1 }
  0x96   :  { %p1469_p13 = scmp.ne.s32.totalorder %s1467_s11, %s1468_s12  ;;  %p1472_p1 = scmp.lt.s32.totalorder %s1703_s6, %s1468_s12 }
  0x98   :  { %p1473_p2 = por %p1472_p1, %p1471_p0 }
  0x9a   :  { %p1474_p3 = pnand %p1473_p2, %p1469_p13 }
  0x9c   :  { %1477 = shalt.err (!%p1474_p3)  }
  0x9d   :  { %229 = dma.hbm_to_vmem [thread:$0]  %s225_s20, 16, %s227_s0, [#allocation3 + $0xb] }
  0x9e   :  { %s1119_s15 = sld [smem:[#allocation5 + $0xd]]  ;;  %s1490_s17 = sshra.s32 %s242_s10, 4  ;;  %s1491_s17 = int_to_ptr.hbm [resolvable:$true] %s1490_s17 }
  0x9f   :  { %s1492_s19 = scalar_lea.hbm %s1491_s17, 1  ;;  %p1495_p5 = scmp.lt.s32.totalorder %s1491_s17, %s1859_s1 }
  0xa0   :  { %p1493_p4 = scmp.ne.s32.totalorder %s1491_s17, %s1492_s19  ;;  %p1496_p6 = scmp.lt.s32.totalorder %s1703_s6, %s1492_s19 }
  0xa2   :  { %p1497_p7 = por %p1496_p6, %p1495_p5 }
  0xa4   :  { %p1498_p8 = pnand %p1497_p7, %p1493_p4 }
  0xa6   :  { %1501 = shalt.err (!%p1498_p8)  }
  0xa7   :  { %246 = dma.hbm_to_vmem [thread:$0]  %s242_s10, 16, %s244_s21, [#allocation3 + $0xc] }
  0xa8   :  { %s1120_s16 = sld [smem:[#allocation5 + $0xe]]  ;;  %s1660_s24 = smov [#allocation2 + $0xd]  }
  0xa9   :  { %s260_s25 = sshll.u32 %s1660_s24, 4  ;;  %s1661_s0 = smov [#allocation2 + $0xe]   ;;  %s261_s25 = int_to_ptr.vmem [resolvable:$true] %s260_s25 }
  0xaa   :  { %s1823_s26 = sshll.u32 %s1661_s0, 4  ;;  %s1826_s18 = sld [smem:[#allocation5 + $0xf]]  ;;  %s278_s26 = int_to_ptr.vmem [resolvable:$true] %s1823_s26 }
  0xab   :  { %s248_s28 = scalar_lea.hbm %s1859_s1, %s1119_s15  ;;  %s1662_s30 = smov [#allocation2 + $0xf]  }
  0xac   :  { %s258_s29 = sshll.u32 %s248_s28, 4  ;;  %s1831_s3 = sshll.u32 %s1662_s30, 4  ;;  %s259_s29 = int_to_ptr.hbm [resolvable:$true] %s258_s29  ;;  %s295_s3 = int_to_ptr.vmem [resolvable:$true] %s1831_s3 }
  0xad   :  { %s1514_s5 = sshra.s32 %s259_s29, 4  ;;  %s1515_s5 = int_to_ptr.hbm [resolvable:$true] %s1514_s5 }
  0xae   :  { %s265_s20 = scalar_lea.hbm %s1859_s1, %s1120_s16  ;;  %s1516_s7 = scalar_lea.hbm %s1515_s5, 1 }
  0xaf   :  { %p1517_p9 = scmp.ne.s32.totalorder %s1515_s5, %s1516_s7  ;;  %p1519_p10 = scmp.lt.s32.totalorder %s1515_s5, %s1859_s1 }
  0xb0   :  { %p1520_p11 = scmp.lt.s32.totalorder %s1703_s6, %s1516_s7 }
  0xb2   :  { %p1521_p12 = por %p1520_p11, %p1519_p10 }
  0xb4   :  { %p1522_p13 = pnand %p1521_p12, %p1517_p9 }
  0xb6   :  { %1525 = shalt.err (!%p1522_p13)  }
  0xb7   :  { %263 = dma.hbm_to_vmem [thread:$0]  %s259_s29, 16, %s261_s25, [#allocation3 + $0xd] }
  0xb8   :  { %s275_s11 = sshll.u32 %s265_s20, 4  ;;  %s282_s14 = scalar_lea.hbm %s1859_s1, %s1826_s18  ;;  %s276_s11 = int_to_ptr.hbm [resolvable:$true] %s275_s11 }
  0xb9   :  { %s1538_s15 = sshra.s32 %s276_s11, 4  ;;  %s1539_s15 = int_to_ptr.hbm [resolvable:$true] %s1538_s15 }
  0xba   :  { %s1540_s17 = scalar_lea.hbm %s1539_s15, 1  ;;  %p1543_p1 = scmp.lt.s32.totalorder %s1539_s15, %s1859_s1 }
  0xbb   :  { %p1541_p0 = scmp.ne.s32.totalorder %s1539_s15, %s1540_s17  ;;  %p1544_p2 = scmp.lt.s32.totalorder %s1703_s6, %s1540_s17 }
  0xbd   :  { %p1545_p3 = por %p1544_p2, %p1543_p1 }
  0xbf   :  { %p1546_p4 = pnand %p1545_p3, %p1541_p0 }
  0xc1   :  { %1549 = shalt.err (!%p1546_p4)  }
  0xc2   :  { %280 = dma.hbm_to_vmem [thread:$0]  %s276_s11, 16, %s278_s26, [#allocation3 + $0xe] }
  0xc3   :  { %s292_s22 = sshll.u32 %s282_s14, 4  ;;  %s293_s22 = int_to_ptr.hbm [resolvable:$true] %s292_s22 }
  0xc4   :  { %s1562_s16 = sshra.s32 %s293_s22, 4  ;;  %s1563_s16 = int_to_ptr.hbm [resolvable:$true] %s1562_s16 }
  0xc5   :  { %s1564_s24 = scalar_lea.hbm %s1563_s16, 1  ;;  %p1567_p6 = scmp.lt.s32.totalorder %s1563_s16, %s1859_s1 }
  0xc6   :  { %p1565_p5 = scmp.ne.s32.totalorder %s1563_s16, %s1564_s24  ;;  %p1568_p7 = scmp.lt.s32.totalorder %s1703_s6, %s1564_s24 }
  0xc8   :  { %p1569_p8 = por %p1568_p7, %p1567_p6 }
  0xca   :  { %p1570_p9 = pnand %p1569_p8, %p1565_p5 }
  0xcc   :  { %1573 = shalt.err (!%p1570_p9)  }
  0xcd   :  { %297 = dma.hbm_to_vmem [thread:$0]  %s293_s22, 16, %s295_s3, [#allocation3 + $0xf] }
  0xce   :  { %1612 = dma.done.wait [#allocation3], 16 }
  0xcf   :  { %1613 = vsyncadd [#allocation3], 4294967280 }
  0xd0   :  { %1614 = dma.done.wait [#allocation3 + $0x1], 16 }
  0xd1   :  { %1615 = vsyncadd [#allocation3 + $0x1], 4294967280 }
  0xd2   :  { %1616 = dma.done.wait [#allocation3 + $0x2], 16 }
  0xd3   :  { %1617 = vsyncadd [#allocation3 + $0x2], 4294967280 }
  0xd4   :  { %1618 = dma.done.wait [#allocation3 + $0x3], 16 }
  0xd5   :  { %1619 = vsyncadd [#allocation3 + $0x3], 4294967280 }
  0xd6   :  { %1620 = dma.done.wait [#allocation3 + $0x4], 16 }
  0xd7   :  { %1621 = vsyncadd [#allocation3 + $0x4], 4294967280 }
  0xd8   :  { %1622 = dma.done.wait [#allocation3 + $0x5], 16 }
  0xd9   :  { %1623 = vsyncadd [#allocation3 + $0x5], 4294967280 }
  0xda   :  { %1624 = dma.done.wait [#allocation3 + $0x6], 16 }
  0xdb   :  { %1625 = vsyncadd [#allocation3 + $0x6], 4294967280 }
  0xdc   :  { %1626 = dma.done.wait [#allocation3 + $0x7], 16 }
  0xdd   :  { %1627 = vsyncadd [#allocation3 + $0x7], 4294967280 }
  0xde   :  { %1628 = dma.done.wait [#allocation3 + $0x8], 16 }
  0xdf   :  { %1629 = vsyncadd [#allocation3 + $0x8], 4294967280 }
  0xe0   :  { %1630 = dma.done.wait [#allocation3 + $0x9], 16 }
  0xe1   :  { %1631 = vsyncadd [#allocation3 + $0x9], 4294967280 }
  0xe2   :  { %1632 = dma.done.wait [#allocation3 + $0xa], 16 }
  0xe3   :  { %1633 = vsyncadd [#allocation3 + $0xa], 4294967280 }
  0xe4   :  { %1634 = dma.done.wait [#allocation3 + $0xb], 16 }
  0xe5   :  { %1635 = vsyncadd [#allocation3 + $0xb], 4294967280 }
  0xe6   :  { %1636 = dma.done.wait [#allocation3 + $0xc], 16 }
  0xe7   :  { %1637 = vsyncadd [#allocation3 + $0xc], 4294967280 }
  0xe8   :  { %1638 = dma.done.wait [#allocation3 + $0xd], 16 }
  0xe9   :  { %1639 = vsyncadd [#allocation3 + $0xd], 4294967280 }
  0xea   :  { %1640 = dma.done.wait [#allocation3 + $0xe], 16 }
  0xeb   :  { %1641 = vsyncadd [#allocation3 + $0xe], 4294967280 }
  0xec   :  { %1642 = dma.done.wait [#allocation3 + $0xf], 16 }
  0xed   :  { %1643 = vsyncadd [#allocation3 + $0xf], 4294967280  ;;  %s1663_s1 = smov [#allocation6]   ;;  %s697_s23 = sshll.u32 %s1860_s2, 4  ;;  %v685_v0 = vld [vmem:[#allocation2] sm:$0xff]  ;;  %v686_v1 = vld [vmem:[#allocation2 + $0x8] sm:$0xff]  ;;  %s698_s23 = int_to_ptr.hbm [resolvable:$true] %s697_s23 }
  0xee   :  { %s695_s6 = sshll.u32 %s1663_s1, 4  ;;  %v687_v2 = vmul.f32 11.313708, %v685_v0  ;;  %v688_v3 = vmul.f32 11.313708, %v686_v1  ;;  %s1664_s27 = smov 128   ;;  %s696_s6 = int_to_ptr.vmem [resolvable:$true] %s695_s6 }
  0xef   :  { %s1665_s28 = smov 8  }
  0xf0   :  { %689 = vst [vmem:[#allocation6] sm:$0xff] %v687_v2 }
  0xf1   :  { %690 = vst [vmem:[#allocation6 + $0x8] sm:$0xff] %v688_v3 }
  0xf2   :  { %703 = dma.vmem_to_hbm [thread:$0]  %s696_s6, 256, %s698_s23, [#allocation7], %s1664_s27, %s1664_s27, %s1665_s28  }
  0xf3   :  { %1644 = dma.done.wait [#allocation7], 256  }
  0xf4   :  { %1645 = vsyncadd [#allocation7], 4294967040 }
  0xf5   :  { %708 = vsyncpa [#allocation7], 1 }
  0xf6   :  { %709 = vsyncmov [#allocation3] }
  0xf9   :  { %s710_s29 = vpop.sfrf %709 }
  0xfa   :  { %p1138_p10 = scmp.ne.s32.totalorder %s710_s29, 0 }
  0xfc   :  { %714 = shalt.err (%p1138_p10)  }
  0xfd   :  { %716 = vsyncmov [#allocation3 + $0x1] }
 0x100   :  { %s717_s2 = vpop.sfrf %716 }
 0x101   :  { %p1139_p11 = scmp.ne.s32.totalorder %s717_s2, 0 }
 0x103   :  { %721 = shalt.err (%p1139_p11)  }
 0x104   :  { %723 = vsyncmov [#allocation3 + $0x2] }
 0x107   :  { %s724_s30 = vpop.sfrf %723 }
 0x108   :  { %p1140_p12 = scmp.ne.s32.totalorder %s724_s30, 0 }
 0x10a   :  { %728 = shalt.err (%p1140_p12)  }
 0x10b   :  { %730 = vsyncmov [#allocation3 + $0x3] }
 0x10e   :  { %s731_s3 = vpop.sfrf %730 }
 0x10f   :  { %p1141_p13 = scmp.ne.s32.totalorder %s731_s3, 0 }
 0x111   :  { %735 = shalt.err (%p1141_p13)  }
 0x112   :  { %737 = vsyncmov [#allocation3 + $0x4] }
 0x115   :  { %s738_s21 = vpop.sfrf %737 }
 0x116   :  { %p1142_p0 = scmp.ne.s32.totalorder %s738_s21, 0 }
 0x118   :  { %742 = shalt.err (%p1142_p0)  }
 0x119   :  { %744 = vsyncmov [#allocation3 + $0x5] }
 0x11c   :  { %s745_s4 = vpop.sfrf %744 }
 0x11d   :  { %p1143_p1 = scmp.ne.s32.totalorder %s745_s4, 0 }
 0x11f   :  { %749 = shalt.err (%p1143_p1)  }
 0x120   :  { %751 = vsyncmov [#allocation3 + $0x6] }
 0x123   :  { %s752_s20 = vpop.sfrf %751 }
 0x124   :  { %p1144_p2 = scmp.ne.s32.totalorder %s752_s20, 0 }
 0x126   :  { %756 = shalt.err (%p1144_p2)  }
 0x127   :  { %758 = vsyncmov [#allocation3 + $0x7] }
 0x12a   :  { %s759_s5 = vpop.sfrf %758 }
 0x12b   :  { %p1145_p3 = scmp.ne.s32.totalorder %s759_s5, 0 }
 0x12d   :  { %763 = shalt.err (%p1145_p3)  }
 0x12e   :  { %765 = vsyncmov [#allocation3 + $0x8] }
 0x131   :  { %s766_s7 = vpop.sfrf %765 }
 0x132   :  { %p1146_p4 = scmp.ne.s32.totalorder %s766_s7, 0 }
 0x134   :  { %770 = shalt.err (%p1146_p4)  }
 0x135   :  { %772 = vsyncmov [#allocation3 + $0x9] }
 0x138   :  { %s773_s9 = vpop.sfrf %772 }
 0x139   :  { %p1147_p5 = scmp.ne.s32.totalorder %s773_s9, 0 }
 0x13b   :  { %777 = shalt.err (%p1147_p5)  }
 0x13c   :  { %779 = vsyncmov [#allocation3 + $0xa] }
 0x13f   :  { %s780_s10 = vpop.sfrf %779 }
 0x140   :  { %p1148_p6 = scmp.ne.s32.totalorder %s780_s10, 0 }
 0x142   :  { %784 = shalt.err (%p1148_p6)  }
 0x143   :  { %786 = vsyncmov [#allocation3 + $0xb] }
 0x146   :  { %s787_s11 = vpop.sfrf %786 }
 0x147   :  { %p1149_p7 = scmp.ne.s32.totalorder %s787_s11, 0 }
 0x149   :  { %791 = shalt.err (%p1149_p7)  }
 0x14a   :  { %793 = vsyncmov [#allocation3 + $0xc] }
 0x14d   :  { %s794_s12 = vpop.sfrf %793 }
 0x14e   :  { %p1150_p8 = scmp.ne.s32.totalorder %s794_s12, 0 }
 0x150   :  { %798 = shalt.err (%p1150_p8)  }
 0x151   :  { %800 = vsyncmov [#allocation3 + $0xd] }
 0x154   :  { %s801_s8 = vpop.sfrf %800 }
 0x155   :  { %p1151_p9 = scmp.ne.s32.totalorder %s801_s8, 0 }
 0x157   :  { %805 = shalt.err (%p1151_p9)  }
 0x158   :  { %807 = vsyncmov [#allocation3 + $0xe] }
 0x15b   :  { %s808_s14 = vpop.sfrf %807 }
 0x15c   :  { %p1152_p10 = scmp.ne.s32.totalorder %s808_s14, 0 }
 0x15e   :  { %812 = shalt.err (%p1152_p10)  }
 0x15f   :  { %814 = vsyncmov [#allocation3 + $0xf] }
 0x162   :  { %s815_s15 = vpop.sfrf %814 }
 0x163   :  { %p1153_p11 = scmp.ne.s32.totalorder %s815_s15, 0 }
 0x165   :  { %819 = shalt.err (%p1153_p11)  }
 0x166   :  { %821 = vsyncmov [#allocation3 + $0x10] }
 0x169   :  { %s822_s17 = vpop.sfrf %821 }
 0x16a   :  { %p1154_p12 = scmp.ne.s32.totalorder %s822_s17, 0 }
 0x16c   :  { %826 = shalt.err (%p1154_p12)  }
 0x16d   :  { %828 = vsyncmov [#allocation3 + $0x11] }
 0x170   :  { %s829_s19 = vpop.sfrf %828 }
 0x171   :  { %p1155_p13 = scmp.ne.s32.totalorder %s829_s19, 0 }
 0x173   :  { %833 = shalt.err (%p1155_p13)  }
 0x174   :  { %835 = vsyncmov [#allocation3 + $0x12] }
 0x177   :  { %s836_s13 = vpop.sfrf %835 }
 0x178   :  { %p1156_p0 = scmp.ne.s32.totalorder %s836_s13, 0 }
 0x17a   :  { %840 = shalt.err (%p1156_p0)  }
 0x17b   :  { %842 = vsyncmov [#allocation3 + $0x13] }
 0x17e   :  { %s843_s22 = vpop.sfrf %842 }
 0x17f   :  { %p1157_p1 = scmp.ne.s32.totalorder %s843_s22, 0 }
 0x181   :  { %847 = shalt.err (%p1157_p1)  }
 0x182   :  { %849 = vsyncmov [#allocation3 + $0x14] }
 0x185   :  { %s850_s16 = vpop.sfrf %849 }
 0x186   :  { %p1158_p2 = scmp.ne.s32.totalorder %s850_s16, 0 }
 0x188   :  { %854 = shalt.err (%p1158_p2)  }
 0x189   :  { %856 = vsyncmov [#allocation3 + $0x15] }
 0x18c   :  { %s857_s24 = vpop.sfrf %856 }
 0x18d   :  { %p1159_p3 = scmp.ne.s32.totalorder %s857_s24, 0 }
 0x18f   :  { %861 = shalt.err (%p1159_p3)  }
 0x190   :  { %863 = vsyncmov [#allocation3 + $0x16] }
 0x193   :  { %s864_s25 = vpop.sfrf %863 }
 0x194   :  { %p1160_p4 = scmp.ne.s32.totalorder %s864_s25, 0 }
 0x196   :  { %868 = shalt.err (%p1160_p4)  }
 0x197   :  { %870 = vsyncmov [#allocation3 + $0x17] }
 0x19a   :  { %s871_s0 = vpop.sfrf %870 }
 0x19b   :  { %p1161_p5 = scmp.ne.s32.totalorder %s871_s0, 0 }
 0x19d   :  { %875 = shalt.err (%p1161_p5)  }
 0x19e   :  { %877 = vsyncmov [#allocation3 + $0x18] }
 0x1a1   :  { %s878_s1 = vpop.sfrf %877 }
 0x1a2   :  { %p1162_p6 = scmp.ne.s32.totalorder %s878_s1, 0 }
 0x1a4   :  { %882 = shalt.err (%p1162_p6)  }
 0x1a5   :  { %884 = vsyncmov [#allocation3 + $0x19] }
 0x1a8   :  { %s885_s6 = vpop.sfrf %884 }
 0x1a9   :  { %p1163_p7 = scmp.ne.s32.totalorder %s885_s6, 0 }
 0x1ab   :  { %889 = shalt.err (%p1163_p7)  }
 0x1ac   :  { %891 = vsyncmov [#allocation3 + $0x1a] }
 0x1af   :  { %s892_s26 = vpop.sfrf %891 }
 0x1b0   :  { %p1164_p8 = scmp.ne.s32.totalorder %s892_s26, 0 }
 0x1b2   :  { %896 = shalt.err (%p1164_p8)  }
 0x1b3   :  { %898 = vsyncmov [#allocation3 + $0x1b] }
 0x1b6   :  { %s899_s18 = vpop.sfrf %898 }
 0x1b7   :  { %p1165_p9 = scmp.ne.s32.totalorder %s899_s18, 0 }
 0x1b9   :  { %903 = shalt.err (%p1165_p9)  }
 0x1ba   :  { %905 = vsyncmov [#allocation3 + $0x1c] }
 0x1bd   :  { %s906_s23 = vpop.sfrf %905 }
 0x1be   :  { %p1166_p10 = scmp.ne.s32.totalorder %s906_s23, 0 }
 0x1c0   :  { %910 = shalt.err (%p1166_p10)  }
 0x1c1   :  { %912 = vsyncmov [#allocation3 + $0x1d] }
 0x1c4   :  { %s913_s27 = vpop.sfrf %912 }
 0x1c5   :  { %p1167_p11 = scmp.ne.s32.totalorder %s913_s27, 0 }
 0x1c7   :  { %917 = shalt.err (%p1167_p11)  }
 0x1c8   :  { %919 = vsyncmov [#allocation3 + $0x1e] }
 0x1cb   :  { %s920_s28 = vpop.sfrf %919 }
 0x1cc   :  { %p1168_p12 = scmp.ne.s32.totalorder %s920_s28, 0 }
 0x1ce   :  { %924 = shalt.err (%p1168_p12)  }
 0x1cf   :  { %926 = vsyncmov [#allocation3 + $0x1f] }
 0x1d2   :  { %s927_s29 = vpop.sfrf %926 }
 0x1d3   :  { %p1169_p13 = scmp.ne.s32.totalorder %s927_s29, 0 }
 0x1d5   :  { %931 = shalt.err (%p1169_p13)  }

</bundles_post_ra>
